<compile_context>
chip_gen: v7x
topology: tpu7x:2x2x1
jax: 0.10.0
libtpu: 0.0.40
codegen_flags: <defaults>
</compile_context>

<pallas_src>
import functools

import jax
import jax.numpy as jnp
from jax import lax
from jax.experimental import pallas as pl
from jax.experimental.pallas import tpu as pltpu

_LANE = 128


def _round_up(x, m):
    return (x + m - 1) // m * m


def _pick_tile(n, preferred=256):
    """Largest tile <= preferred dividing n (or n itself when small/awkward)."""
    if n <= preferred:
        return n
    for t in (256, 128, 64, 32, 16, 8):
        if n % t == 0:
            return t
    return n  # fallback: single tile (always correct)


# ---------------------------------------------------------------------------
# Kernel 1: fused, head-padded QKV projection (one wide MXU matmul).
# ---------------------------------------------------------------------------
def _qkv_proj_kernel(x_ref, w_ref, b_ref, qkv_ref):
    """x_ref: (1, tr, d_model) f32; w_ref: (d_model, h*3*dpad) bf16;
    b_ref: (1, h*3*dpad) f32; qkv_ref: (1, tr, h*3*dpad) bf16."""
    x = x_ref[0].astype(jnp.bfloat16)                      # bf16 MXU operand
    acc = jnp.dot(x, w_ref[...], preferred_element_type=jnp.float32)
    qkv_ref[0] = (acc + b_ref[...]).astype(qkv_ref.dtype)  # lane-dense store


# ---------------------------------------------------------------------------
# Kernel 2: flash attention, grid = (batch, head, q-tile, kv-tile).
# ---------------------------------------------------------------------------
def _flash_attn_kernel(q_ref, k_ref, v_ref, o_ref, m_ref, l_ref, acc_ref):
    ki = pl.program_id(3)

    @pl.when(ki == 0)
    def _():
        m_ref[...] = jnp.full(m_ref.shape, -jnp.inf, dtype=m_ref.dtype)
        l_ref[...] = jnp.zeros(l_ref.shape, dtype=l_ref.dtype)
        acc_ref[...] = jnp.zeros(acc_ref.shape, dtype=acc_ref.dtype)

    q = q_ref[0]                      # (tq, dpad) bf16, already scaled by 1/temp
    k = k_ref[0]                      # (tk, dpad) bf16
    # scores = q @ k^T without materializing k.T; f32 accumulation on the MXU.
    s = lax.dot_general(q, k, (((1,), (1,)), ((), ())),
                        preferred_element_type=jnp.float32)   # (tq, tk)

    m_prev = m_ref[...]
    m_new = jnp.maximum(m_prev, jnp.max(s, axis=-1, keepdims=True))
    alpha = jnp.exp(m_prev - m_new)                            # f32 softmax math
    p = jnp.exp(s - m_new)
    l_ref[...] = alpha * l_ref[...] + jnp.sum(p, axis=-1, keepdims=True)
    acc_ref[...] = alpha * acc_ref[...] + jnp.dot(
        p.astype(jnp.bfloat16), v_ref[0], preferred_element_type=jnp.float32)
    m_ref[...] = m_new
    # dropout(p=0.1) on the attention weights is identity in eval mode.

    @pl.when(ki == pl.num_programs(3) - 1)
    def _():
        inv = pl.reciprocal(l_ref[...], approx=True)           # EUP vrcp slot
        o_ref[0] = (acc_ref[...] * inv).astype(o_ref.dtype)    # lane-dense store


# ---------------------------------------------------------------------------
# One attention branch (temporal or spatial).
# ---------------------------------------------------------------------------
def _one_branch(x, w_fused, b_fused, *, h, d_k, d_v, dpad):
    bsz, n, d_model = x.shape
    per_head = 3 * dpad
    w_total = h * per_head

    tr = _pick_tile(n)     # projection row tile
    tq = _pick_tile(n)     # query tile  (>=256 preferred when n is large)
    tk = _pick_tile(n)     # kv tile

    # --- Stage 1: fused QKV projection into padded head-major layout --------
    qkv = pl.pallas_call(
        _qkv_proj_kernel,
        out_shape=jax.ShapeDtypeStruct((bsz, n, w_total), jnp.bfloat16),
        grid_spec=pltpu.PrefetchScalarGridSpec(
            num_scalar_prefetch=0,
            grid=(bsz, n // tr),
            in_specs=[
                pl.BlockSpec((1, tr, d_model), lambda b, r: (b, r, 0)),   # x
                pl.BlockSpec((d_model, w_total), lambda b, r: (0, 0)),    # W_qkv
                pl.BlockSpec((1, w_total), lambda b, r: (0, 0)),          # b_qkv
            ],
            out_specs=pl.BlockSpec((1, tr, w_total), lambda b, r: (b, r, 0)),
        ),
        compiler_params=pltpu.CompilerParams(
            dimension_semantics=("parallel", "parallel")),
    )(x, w_fused, b_fused)

    # --- Stage 2: flash attention (online softmax over kv tiles) ------------
    # Per-head q/k/v chunks are whole lane-aligned blocks of qkv's last axis:
    # head hh -> blocks 3*hh (q), 3*hh+1 (k), 3*hh+2 (v), each dpad wide.
    out_pad = pl.pallas_call(
        _flash_attn_kernel,
        out_shape=jax.ShapeDtypeStruct((bsz, n, h * dpad), x.dtype),
        grid_spec=pltpu.PrefetchScalarGridSpec(
            num_scalar_prefetch=0,
            grid=(bsz, h, n // tq, n // tk),
            in_specs=[
                pl.BlockSpec((1, tq, dpad), lambda b, hh, qi, ki: (b, qi, 3 * hh)),
                pl.BlockSpec((1, tk, dpad), lambda b, hh, qi, ki: (b, ki, 3 * hh + 1)),
                pl.BlockSpec((1, tk, dpad), lambda b, hh, qi, ki: (b, ki, 3 * hh + 2)),
            ],
            out_specs=pl.BlockSpec((1, tq, dpad),
                                   lambda b, hh, qi, ki: (b, qi, hh)),
            scratch_shapes=[
                pltpu.VMEM((tq, 1), jnp.float32),     # m (running max)
                pltpu.VMEM((tq, 1), jnp.float32),     # l (running denom)
                pltpu.VMEM((tq, dpad), jnp.float32),  # acc
            ],
        ),
        compiler_params=pltpu.CompilerParams(
            dimension_semantics=("parallel", "parallel", "parallel", "arbitrary")),
    )(qkv, qkv, qkv)

    # Strip the per-head lane padding -> final (bs, n, h*d_v) interleaved layout.
    out = out_pad.reshape(bsz, n, h, dpad)[..., :d_v].reshape(bsz, n, h * d_v)
    return out


@functools.partial(jax.jit, static_argnames=("h", "d_k", "d_v", "dpad"))
def _forward(temporal, spatial, w_t, b_t, w_s, b_s, *, h, d_k, d_v, dpad):
    # Both branches in one jitted program -> single dispatch, overlapped launch.
    t_out = _one_branch(temporal, w_t, b_t, h=h, d_k=d_k, d_v=d_v, dpad=dpad)
    s_out = _one_branch(spatial, w_s, b_s, h=h, d_k=d_k, d_v=d_v, dpad=dpad)
    return t_out, s_out


def _make_linear(key, d_in, d_out):
    """PyTorch-style Linear params, weight stored pre-transposed (d_in, d_out)."""
    kw, kb = jax.random.split(key)
    bound = 1.0 / (d_in ** 0.5)
    w_t = jax.random.uniform(kw, (d_in, d_out),
                             minval=-bound, maxval=bound, dtype=jnp.float32)
    b = jax.random.uniform(kb, (d_out,),
                           minval=-bound, maxval=bound, dtype=jnp.float32)
    return w_t, b


class FactorisedDotProductAttentionPallas:
    def __init__(self, n_head, d_model, d_k, d_v, key):
        assert n_head % 2 == 0
        self.n_head, self.d_model, self.d_k, self.d_v = n_head, d_model, d_k, d_v
        h = n_head // 2
        self.dpad = _round_up(max(d_k, d_v), _LANE)
        temperature = float(d_k) ** 0.5

        keys = jax.random.split(key, 6)
        names = ["qt", "kt", "vt", "qs", "ks", "vs"]
        dims = [d_k, d_k, d_v, d_k, d_k, d_v]
        self.params = {}
        for name, dd, k in zip(names, dims, keys):
            w, b = _make_linear(k, d_model, h * dd)
            self.params[name] = dict(w=w, b=b)

        # Fused, head-major, 128-lane-padded [Wq/temp | Wk | Wv] per head.
        def fuse(qn, kn, vn):
            p = self.params
            dpad = self.dpad

            def pad_last(a):
                return jnp.pad(a, [(0, 0)] * (a.ndim - 1) + [(0, dpad - a.shape[-1])])

            wq = pad_last((p[qn]["w"] / temperature).reshape(d_model, h, d_k))
            wk = pad_last(p[kn]["w"].reshape(d_model, h, d_k))
            wv = pad_last(p[vn]["w"].reshape(d_model, h, d_v))
            bq = pad_last((p[qn]["b"] / temperature).reshape(h, d_k))
            bk = pad_last(p[kn]["b"].reshape(h, d_k))
            bv = pad_last(p[vn]["b"].reshape(h, d_v))

            w = jnp.concatenate([wq, wk, wv], axis=-1).reshape(d_model, h * 3 * dpad)
            b = jnp.concatenate([bq, bk, bv], axis=-1).reshape(1, h * 3 * dpad)
            return w.astype(jnp.bfloat16), b.astype(jnp.float32)

        self.w_t, self.b_t = fuse("qt", "kt", "vt")
        self.w_s, self.b_s = fuse("qs", "ks", "vs")

    def __call__(self, temporal, spatial):
        h = self.n_head // 2
        return _forward(temporal, spatial,
                        self.w_t, self.b_t, self.w_s, self.b_s,
                        h=h, d_k=self.d_k, d_v=self.d_v, dpad=self.dpad)

    # Pure-JAX f32 reference (mirrors the PyTorch forward) for verification.
    def reference(self, temporal, spatial):
        def branch(x, pq, pk, pv):
            bsz, n, _ = x.shape
            h = self.n_head // 2
            q = (x @ pq["w"] + pq["b"]).reshape(bsz, n, h, self.d_k).transpose(0, 2, 1, 3)
            k = (x @ pk["w"] + pk["b"]).reshape(bsz, n, h, self.d_k).transpose(0, 2, 1, 3)
            v = (x @ pv["w"] + pv["b"]).reshape(bsz, n, h, self.d_v).transpose(0, 2, 1, 3)
            attn = jax.nn.softmax(
                jnp.einsum("bhqd,bhkd->bhqk", q / (self.d_k ** 0.5), k), axis=-1)
            out = jnp.einsum("bhqk,bhkd->bhqd", attn, v)
            return out.transpose(0, 2, 1, 3).reshape(bsz, n, -1)

        p = self.params
        return (branch(temporal, p["qt"], p["kt"], p["vt"]),
                branch(spatial, p["qs"], p["ks"], p["vs"]))


if __name__ == "__main__":
    key = jax.random.PRNGKey(0)
    k_param, k_t, k_s = jax.random.split(key, 3)

    bs, n_t, n_s, d_model = 2, 8, 16, 32
    n_head, d_k, d_v = 4, 8, 8

    module = FactorisedDotProductAttentionPallas(n_head, d_model, d_k, d_v, k_param)

    temporal = jax.random.normal(k_t, (bs, n_t, d_model), dtype=jnp.float32)
    spatial = jax.random.normal(k_s, (bs, n_s, d_model), dtype=jnp.float32)

    t_out, s_out = module(temporal, spatial)
    jax.block_until_ready((t_out, s_out))

    t_ref, s_ref = module.reference(temporal, spatial)
    assert t_out.shape == (bs, n_t, (n_head // 2) * d_v)
    assert s_out.shape == (bs, n_s, (n_head // 2) * d_v)
    # bf16 MXU inputs + approx reciprocal -> relaxed (but tight enough) tolerance.
    assert jnp.allclose(t_out, t_ref, atol=5e-2, rtol=5e-2), "temporal mismatch"
    assert jnp.allclose(s_out, s_ref, atol=5e-2, rtol=5e-2), "spatial mismatch"

    print("KERNEL_OK")
</pallas_src>

<mosaic_0001>
module attributes {stable_mosaic.version = 11 : i64} {
  func.func @_flash_attn_kernel(%arg0: i32, %arg1: i32, %arg2: i32, %arg3: i32, %arg4: memref<1x16x128xbf16, #tpu.memory_space<vmem>>, %arg5: memref<1x16x128xbf16, #tpu.memory_space<vmem>>, %arg6: memref<1x16x128xbf16, #tpu.memory_space<vmem>>, %arg7: memref<1x16x128xf32, #tpu.memory_space<vmem>>, %arg8: memref<16x1xf32, #tpu.memory_space<vmem>>, %arg9: memref<16x1xf32, #tpu.memory_space<vmem>>, %arg10: memref<16x128xf32, #tpu.memory_space<vmem>>) attributes {dimension_semantics = [#tpu.dimension_semantics<parallel>, #tpu.dimension_semantics<parallel>, #tpu.dimension_semantics<parallel>, #tpu.dimension_semantics<arbitrary>], iteration_bounds = array<i64: 2, 2, 1, 1>, scalar_prefetch = 0 : i64, scratch_operands = 3 : i64, tpu.core_type = #tpu.core_type<tc>, window_params = [{transform_indices = @transform_0, window_bounds = array<i64: 1, 16, 128>}, {transform_indices = @transform_1, window_bounds = array<i64: 1, 16, 128>}, {transform_indices = @transform_2, window_bounds = array<i64: 1, 16, 128>}, {transform_indices = @transform_3, window_bounds = array<i64: 1, 16, 128>}]} {
    %c0_i32 = arith.constant 0 : i32
    %0 = arith.cmpi eq, %arg3, %c0_i32 : i32
    %1 = arith.extui %0 : i1 to i32
    %c0_i32_0 = arith.constant 0 : i32
    %2 = arith.cmpi ne, %1, %c0_i32_0 : i32
    scf.if %2 {
      %cst_26 = arith.constant 0xFF800000 : f32
      %36 = vector.broadcast %cst_26 : f32 to vector<16x1xf32>
      %c0_27 = arith.constant 0 : index
      %c0_28 = arith.constant 0 : index
      %37 = vector.load %arg8[%c0_27, %c0_28] : memref<16x1xf32, #tpu.memory_space<vmem>>, vector<16x1xf32>
      tpu.vector_store %arg8[%c0_27, %c0_28], %36 {strides = array<i32>} : memref<16x1xf32, #tpu.memory_space<vmem>>, vector<16x1xf32>,
      %cst_29 = arith.constant 0.000000e+00 : f32
      %38 = vector.broadcast %cst_29 : f32 to vector<16x1xf32>
      %c0_30 = arith.constant 0 : index
      %c0_31 = arith.constant 0 : index
      %39 = vector.load %arg9[%c0_30, %c0_31] : memref<16x1xf32, #tpu.memory_space<vmem>>, vector<16x1xf32>
      tpu.vector_store %arg9[%c0_30, %c0_31], %38 {strides = array<i32>} : memref<16x1xf32, #tpu.memory_space<vmem>>, vector<16x1xf32>,
      %cst_32 = arith.constant 0.000000e+00 : f32
      %40 = vector.broadcast %cst_32 : f32 to vector<16x128xf32>
      %c0_33 = arith.constant 0 : index
      %c0_34 = arith.constant 0 : index
      %41 = vector.load %arg10[%c0_33, %c0_34] : memref<16x128xf32, #tpu.memory_space<vmem>>, vector<16x128xf32>
      tpu.vector_store %arg10[%c0_33, %c0_34], %40 {strides = array<i32>} : memref<16x128xf32, #tpu.memory_space<vmem>>, vector<16x128xf32>,
    } else {
    }
    %c0 = arith.constant 0 : index
    %c0_1 = arith.constant 0 : index
    %c0_2 = arith.constant 0 : index
    %3 = vector.load %arg4[%c0, %c0_1, %c0_2] : memref<1x16x128xbf16, #tpu.memory_space<vmem>>, vector<1x16x128xbf16>
    %4 = vector.shape_cast %3 : vector<1x16x128xbf16> to vector<16x128xbf16>
    %c0_3 = arith.constant 0 : index
    %c0_4 = arith.constant 0 : index
    %c0_5 = arith.constant 0 : index
    %5 = vector.load %arg5[%c0_3, %c0_4, %c0_5] : memref<1x16x128xbf16, #tpu.memory_space<vmem>>, vector<1x16x128xbf16>
    %6 = vector.shape_cast %5 : vector<1x16x128xbf16> to vector<16x128xbf16>
    %cst = arith.constant dense<0.000000e+00> : vector<16x16xf32>
    %7 = tpu.matmul %4, %6, %cst {dimension_numbers = #tpu.dot_dimension_numbers<[1], [1], [0], [0], [0, 0, 1, 0], [], []>} : vector<16x128xbf16>, vector<16x128xbf16>, vector<16x16xf32> -> vector<16x16xf32>
    %c0_6 = arith.constant 0 : index
    %c0_7 = arith.constant 0 : index
    %8 = vector.load %arg8[%c0_6, %c0_7] : memref<16x1xf32, #tpu.memory_space<vmem>>, vector<16x1xf32>
    %cst_8 = arith.constant dense<0xFF800000> : vector<16xf32>
    %9 = vector.multi_reduction <maximumf>, %7, %cst_8 [1] : vector<16x16xf32> to vector<16xf32>
    %10 = vector.shape_cast %9 : vector<16xf32> to vector<16x1xf32>
    %11 = arith.maximumf %8, %10 : vector<16x1xf32>
    %12 = arith.subf %8, %11 : vector<16x1xf32>
    %13 = math.exp %12 : vector<16x1xf32>
    %14 = vector.broadcast %11 : vector<16x1xf32> to vector<16x16xf32>
    %15 = arith.subf %7, %14 : vector<16x16xf32>
    %16 = math.exp %15 : vector<16x16xf32>
    %c0_9 = arith.constant 0 : index
    %c0_10 = arith.constant 0 : index
    %17 = vector.load %arg9[%c0_9, %c0_10] : memref<16x1xf32, #tpu.memory_space<vmem>>, vector<16x1xf32>
    %18 = arith.mulf %13, %17 : vector<16x1xf32>
    %cst_11 = arith.constant dense<0.000000e+00> : vector<16xf32>
    %19 = vector.multi_reduction <add>, %16, %cst_11 [1] : vector<16x16xf32> to vector<16xf32>
    %20 = vector.shape_cast %19 : vector<16xf32> to vector<16x1xf32>
    %21 = arith.addf %18, %20 : vector<16x1xf32>
    %c0_12 = arith.constant 0 : index
    %c0_13 = arith.constant 0 : index
    %22 = vector.load %arg9[%c0_12, %c0_13] : memref<16x1xf32, #tpu.memory_space<vmem>>, vector<16x1xf32>
    tpu.vector_store %arg9[%c0_12, %c0_13], %21 {strides = array<i32>} : memref<16x1xf32, #tpu.memory_space<vmem>>, vector<16x1xf32>,
    %c0_14 = arith.constant 0 : index
    %c0_15 = arith.constant 0 : index
    %23 = vector.load %arg10[%c0_14, %c0_15] : memref<16x128xf32, #tpu.memory_space<vmem>>, vector<16x128xf32>
    %24 = vector.broadcast %13 : vector<16x1xf32> to vector<16x128xf32>
    %25 = arith.mulf %24, %23 : vector<16x128xf32>
    %26 = arith.truncf %16 : vector<16x16xf32> to vector<16x16xbf16>
    %c0_16 = arith.constant 0 : index
    %c0_17 = arith.constant 0 : index
    %c0_18 = arith.constant 0 : index
    %27 = vector.load %arg6[%c0_16, %c0_17, %c0_18] : memref<1x16x128xbf16, #tpu.memory_space<vmem>>, vector<1x16x128xbf16>
    %28 = vector.shape_cast %27 : vector<1x16x128xbf16> to vector<16x128xbf16>
    %cst_19 = arith.constant dense<0.000000e+00> : vector<16x128xf32>
    %29 = tpu.matmul %26, %28, %cst_19 {dimension_numbers = #tpu.dot_dimension_numbers<[1], [0], [0], [1], [0, 0, 1, 1], [], []>} : vector<16x16xbf16>, vector<16x128xbf16>, vector<16x128xf32> -> vector<16x128xf32>
    %30 = arith.addf %25, %29 : vector<16x128xf32>
    %c0_20 = arith.constant 0 : index
    %c0_21 = arith.constant 0 : index
    %31 = vector.load %arg10[%c0_20, %c0_21] : memref<16x128xf32, #tpu.memory_space<vmem>>, vector<16x128xf32>
    tpu.vector_store %arg10[%c0_20, %c0_21], %30 {strides = array<i32>} : memref<16x128xf32, #tpu.memory_space<vmem>>, vector<16x128xf32>,
    %c0_22 = arith.constant 0 : index
    %c0_23 = arith.constant 0 : index
    %32 = vector.load %arg8[%c0_22, %c0_23] : memref<16x1xf32, #tpu.memory_space<vmem>>, vector<16x1xf32>
    tpu.vector_store %arg8[%c0_22, %c0_23], %11 {strides = array<i32>} : memref<16x1xf32, #tpu.memory_space<vmem>>, vector<16x1xf32>,
    %c0_i32_24 = arith.constant 0 : i32
    %33 = arith.cmpi eq, %arg3, %c0_i32_24 : i32
    %34 = arith.extui %33 : i1 to i32
    %c0_i32_25 = arith.constant 0 : i32
    %35 = arith.cmpi ne, %34, %c0_i32_25 : i32
    scf.if %35 {
      %c0_26 = arith.constant 0 : index
      %c0_27 = arith.constant 0 : index
      %36 = vector.load %arg9[%c0_26, %c0_27] : memref<16x1xf32, #tpu.memory_space<vmem>>, vector<16x1xf32>
      %37 = tpu.reciprocal %36 {approx = true} : vector<16x1xf32> -> vector<16x1xf32>
      %c0_28 = arith.constant 0 : index
      %c0_29 = arith.constant 0 : index
      %38 = vector.load %arg10[%c0_28, %c0_29] : memref<16x128xf32, #tpu.memory_space<vmem>>, vector<16x128xf32>
      %39 = vector.broadcast %37 : vector<16x1xf32> to vector<16x128xf32>
      %40 = arith.mulf %38, %39 : vector<16x128xf32>
      %c0_30 = arith.constant 0 : index
      %c0_31 = arith.constant 0 : index
      %c0_32 = arith.constant 0 : index
      %41 = vector.load %arg7[%c0_30, %c0_31, %c0_32] : memref<1x16x128xf32, #tpu.memory_space<vmem>>, vector<1x16x128xf32>
      %42 = vector.shape_cast %41 : vector<1x16x128xf32> to vector<16x128xf32>
      %43 = vector.shape_cast %40 : vector<16x128xf32> to vector<1x16x128xf32>
      tpu.vector_store %arg7[%c0_30, %c0_31, %c0_32], %43 {strides = array<i32>} : memref<1x16x128xf32, #tpu.memory_space<vmem>>, vector<1x16x128xf32>,
    } else {
    }
    return
  }
  func.func @transform_0(%arg0: i32, %arg1: i32, %arg2: i32, %arg3: i32) -> (i32, i32, i32) {
    %c3_i32 = arith.constant 3 : i32
    %0 = arith.muli %c3_i32, %arg1 : i32
    %c0_i32 = arith.constant 0 : i32
    return %arg0, %arg2, %0 : i32, i32, i32
  }
  func.func @transform_1(%arg0: i32, %arg1: i32, %arg2: i32, %arg3: i32) -> (i32, i32, i32) {
    %c3_i32 = arith.constant 3 : i32
    %0 = arith.muli %c3_i32, %arg1 : i32
    %c1_i32 = arith.constant 1 : i32
    %1 = arith.addi %0, %c1_i32 : i32
    %c0_i32 = arith.constant 0 : i32
    return %arg0, %arg3, %1 : i32, i32, i32
  }
  func.func @transform_2(%arg0: i32, %arg1: i32, %arg2: i32, %arg3: i32) -> (i32, i32, i32) {
    %c3_i32 = arith.constant 3 : i32
    %0 = arith.muli %c3_i32, %arg1 : i32
    %c2_i32 = arith.constant 2 : i32
    %1 = arith.addi %0, %c2_i32 : i32
    %c0_i32 = arith.constant 0 : i32
    return %arg0, %arg3, %1 : i32, i32, i32
  }
  func.func @transform_3(%arg0: i32, %arg1: i32, %arg2: i32, %arg3: i32) -> (i32, i32, i32) {
    %c0_i32 = arith.constant 0 : i32
    return %arg0, %arg2, %arg1 : i32, i32, i32
  }
}

module attributes {stable_mosaic.version = 11 : i64} {
  func.func @_qkv_proj_kernel(%arg0: i32, %arg1: i32, %arg2: memref<1x16x32xf32, #tpu.memory_space<vmem>>, %arg3: memref<32x768xbf16, #tpu.memory_space<vmem>>, %arg4: memref<1x768xf32, #tpu.memory_space<vmem>>, %arg5: memref<1x16x768xbf16, #tpu.memory_space<vmem>>) attributes {dimension_semantics = [#tpu.dimension_semantics<parallel>, #tpu.dimension_semantics<parallel>], iteration_bounds = array<i64: 2, 1>, scalar_prefetch = 0 : i64, scratch_operands = 0 : i64, tpu.core_type = #tpu.core_type<tc>, window_params = [{transform_indices = @transform_0, window_bounds = array<i64: 1, 16, 32>}, {pipeline_mode = #tpu.pipeline_mode<synchronous>, transform_indices = @transform_1, window_bounds = array<i64: 32, 768>}, {pipeline_mode = #tpu.pipeline_mode<synchronous>, transform_indices = @transform_2, window_bounds = array<i64: 1, 768>}, {transform_indices = @transform_3, window_bounds = array<i64: 1, 16, 768>}]} {
    %c0 = arith.constant 0 : index
    %c0_0 = arith.constant 0 : index
    %c0_1 = arith.constant 0 : index
    %0 = vector.load %arg2[%c0, %c0_0, %c0_1] : memref<1x16x32xf32, #tpu.memory_space<vmem>>, vector<1x16x32xf32>
    %1 = vector.shape_cast %0 : vector<1x16x32xf32> to vector<16x32xf32>
    %2 = arith.truncf %1 : vector<16x32xf32> to vector<16x32xbf16>
    %c0_2 = arith.constant 0 : index
    %c0_3 = arith.constant 0 : index
    %3 = vector.load %arg3[%c0_2, %c0_3] : memref<32x768xbf16, #tpu.memory_space<vmem>>, vector<32x768xbf16>
    %cst = arith.constant dense<0.000000e+00> : vector<16x768xf32>
    %4 = tpu.matmul %2, %3, %cst {dimension_numbers = #tpu.dot_dimension_numbers<[1], [0], [0], [1], [0, 0, 1, 1], [], []>} : vector<16x32xbf16>, vector<32x768xbf16>, vector<16x768xf32> -> vector<16x768xf32>
    %c0_4 = arith.constant 0 : index
    %c0_5 = arith.constant 0 : index
    %5 = vector.load %arg4[%c0_4, %c0_5] : memref<1x768xf32, #tpu.memory_space<vmem>>, vector<1x768xf32>
    %6 = vector.broadcast %5 : vector<1x768xf32> to vector<16x768xf32>
    %7 = arith.addf %4, %6 : vector<16x768xf32>
    %8 = arith.truncf %7 : vector<16x768xf32> to vector<16x768xbf16>
    %c0_6 = arith.constant 0 : index
    %c0_7 = arith.constant 0 : index
    %c0_8 = arith.constant 0 : index
    %9 = vector.load %arg5[%c0_6, %c0_7, %c0_8] : memref<1x16x768xbf16, #tpu.memory_space<vmem>>, vector<1x16x768xbf16>
    %10 = vector.shape_cast %9 : vector<1x16x768xbf16> to vector<16x768xbf16>
    %11 = vector.shape_cast %8 : vector<16x768xbf16> to vector<1x16x768xbf16>
    tpu.vector_store %arg5[%c0_6, %c0_7, %c0_8], %11 {strides = array<i32>} : memref<1x16x768xbf16, #tpu.memory_space<vmem>>, vector<1x16x768xbf16>,
    return
  }
  func.func @transform_0(%arg0: i32, %arg1: i32) -> (i32, i32, i32) {
    %c0_i32 = arith.constant 0 : i32
    %c0_i32_0 = arith.constant 0 : i32
    return %arg0, %arg1, %c0_i32 : i32, i32, i32
  }
  func.func @transform_1(%arg0: i32, %arg1: i32) -> (i32, i32) {
    %c0_i32 = arith.constant 0 : i32
    %c0_i32_0 = arith.constant 0 : i32
    %c0_i32_1 = arith.constant 0 : i32
    return %c0_i32, %c0_i32_0 : i32, i32
  }
  func.func @transform_2(%arg0: i32, %arg1: i32) -> (i32, i32) {
    %c0_i32 = arith.constant 0 : i32
    %c0_i32_0 = arith.constant 0 : i32
    %c0_i32_1 = arith.constant 0 : i32
    return %c0_i32, %c0_i32_0 : i32, i32
  }
  func.func @transform_3(%arg0: i32, %arg1: i32) -> (i32, i32, i32) {
    %c0_i32 = arith.constant 0 : i32
    %c0_i32_0 = arith.constant 0 : i32
    return %arg0, %arg1, %c0_i32 : i32, i32, i32
  }
}

module attributes {stable_mosaic.version = 11 : i64} {
  func.func @_qkv_proj_kernel(%arg0: i32, %arg1: i32, %arg2: memref<1x8x32xf32, #tpu.memory_space<vmem>>, %arg3: memref<32x768xbf16, #tpu.memory_space<vmem>>, %arg4: memref<1x768xf32, #tpu.memory_space<vmem>>, %arg5: memref<1x8x768xbf16, #tpu.memory_space<vmem>>) attributes {dimension_semantics = [#tpu.dimension_semantics<parallel>, #tpu.dimension_semantics<parallel>], iteration_bounds = array<i64: 2, 1>, scalar_prefetch = 0 : i64, scratch_operands = 0 : i64, tpu.core_type = #tpu.core_type<tc>, window_params = [{transform_indices = @transform_0, window_bounds = array<i64: 1, 8, 32>}, {pipeline_mode = #tpu.pipeline_mode<synchronous>, transform_indices = @transform_1, window_bounds = array<i64: 32, 768>}, {pipeline_mode = #tpu.pipeline_mode<synchronous>, transform_indices = @transform_2, window_bounds = array<i64: 1, 768>}, {transform_indices = @transform_3, window_bounds = array<i64: 1, 8, 768>}]} {
    %c0 = arith.constant 0 : index
    %c0_0 = arith.constant 0 : index
    %c0_1 = arith.constant 0 : index
    %0 = vector.load %arg2[%c0, %c0_0, %c0_1] : memref<1x8x32xf32, #tpu.memory_space<vmem>>, vector<1x8x32xf32>
    %1 = vector.shape_cast %0 : vector<1x8x32xf32> to vector<8x32xf32>
    %2 = arith.truncf %1 : vector<8x32xf32> to vector<8x32xbf16>
    %c0_2 = arith.constant 0 : index
    %c0_3 = arith.constant 0 : index
    %3 = vector.load %arg3[%c0_2, %c0_3] : memref<32x768xbf16, #tpu.memory_space<vmem>>, vector<32x768xbf16>
    %cst = arith.constant dense<0.000000e+00> : vector<8x768xf32>
    %4 = tpu.matmul %2, %3, %cst {dimension_numbers = #tpu.dot_dimension_numbers<[1], [0], [0], [1], [0, 0, 1, 1], [], []>} : vector<8x32xbf16>, vector<32x768xbf16>, vector<8x768xf32> -> vector<8x768xf32>
    %c0_4 = arith.constant 0 : index
    %c0_5 = arith.constant 0 : index
    %5 = vector.load %arg4[%c0_4, %c0_5] : memref<1x768xf32, #tpu.memory_space<vmem>>, vector<1x768xf32>
    %6 = vector.broadcast %5 : vector<1x768xf32> to vector<8x768xf32>
    %7 = arith.addf %4, %6 : vector<8x768xf32>
    %8 = arith.truncf %7 : vector<8x768xf32> to vector<8x768xbf16>
    %c0_6 = arith.constant 0 : index
    %c0_7 = arith.constant 0 : index
    %c0_8 = arith.constant 0 : index
    %9 = vector.load %arg5[%c0_6, %c0_7, %c0_8] : memref<1x8x768xbf16, #tpu.memory_space<vmem>>, vector<1x8x768xbf16>
    %10 = vector.shape_cast %9 : vector<1x8x768xbf16> to vector<8x768xbf16>
    %11 = vector.shape_cast %8 : vector<8x768xbf16> to vector<1x8x768xbf16>
    tpu.vector_store %arg5[%c0_6, %c0_7, %c0_8], %11 {strides = array<i32>} : memref<1x8x768xbf16, #tpu.memory_space<vmem>>, vector<1x8x768xbf16>,
    return
  }
  func.func @transform_0(%arg0: i32, %arg1: i32) -> (i32, i32, i32) {
    %c0_i32 = arith.constant 0 : i32
    %c0_i32_0 = arith.constant 0 : i32
    return %arg0, %arg1, %c0_i32 : i32, i32, i32
  }
  func.func @transform_1(%arg0: i32, %arg1: i32) -> (i32, i32) {
    %c0_i32 = arith.constant 0 : i32
    %c0_i32_0 = arith.constant 0 : i32
    %c0_i32_1 = arith.constant 0 : i32
    return %c0_i32, %c0_i32_0 : i32, i32
  }
  func.func @transform_2(%arg0: i32, %arg1: i32) -> (i32, i32) {
    %c0_i32 = arith.constant 0 : i32
    %c0_i32_0 = arith.constant 0 : i32
    %c0_i32_1 = arith.constant 0 : i32
    return %c0_i32, %c0_i32_0 : i32, i32
  }
  func.func @transform_3(%arg0: i32, %arg1: i32) -> (i32, i32, i32) {
    %c0_i32 = arith.constant 0 : i32
    %c0_i32_0 = arith.constant 0 : i32
    return %arg0, %arg1, %c0_i32 : i32, i32, i32
  }
}

module attributes {stable_mosaic.version = 11 : i64} {
  func.func @_flash_attn_kernel(%arg0: i32, %arg1: i32, %arg2: i32, %arg3: i32, %arg4: memref<1x8x128xbf16, #tpu.memory_space<vmem>>, %arg5: memref<1x8x128xbf16, #tpu.memory_space<vmem>>, %arg6: memref<1x8x128xbf16, #tpu.memory_space<vmem>>, %arg7: memref<1x8x128xf32, #tpu.memory_space<vmem>>, %arg8: memref<8x1xf32, #tpu.memory_space<vmem>>, %arg9: memref<8x1xf32, #tpu.memory_space<vmem>>, %arg10: memref<8x128xf32, #tpu.memory_space<vmem>>) attributes {dimension_semantics = [#tpu.dimension_semantics<parallel>, #tpu.dimension_semantics<parallel>, #tpu.dimension_semantics<parallel>, #tpu.dimension_semantics<arbitrary>], iteration_bounds = array<i64: 2, 2, 1, 1>, scalar_prefetch = 0 : i64, scratch_operands = 3 : i64, tpu.core_type = #tpu.core_type<tc>, window_params = [{transform_indices = @transform_0, window_bounds = array<i64: 1, 8, 128>}, {transform_indices = @transform_1, window_bounds = array<i64: 1, 8, 128>}, {transform_indices = @transform_2, window_bounds = array<i64: 1, 8, 128>}, {transform_indices = @transform_3, window_bounds = array<i64: 1, 8, 128>}]} {
    %c0_i32 = arith.constant 0 : i32
    %0 = arith.cmpi eq, %arg3, %c0_i32 : i32
    %1 = arith.extui %0 : i1 to i32
    %c0_i32_0 = arith.constant 0 : i32
    %2 = arith.cmpi ne, %1, %c0_i32_0 : i32
    scf.if %2 {
      %cst_26 = arith.constant 0xFF800000 : f32
      %36 = vector.broadcast %cst_26 : f32 to vector<8x1xf32>
      %c0_27 = arith.constant 0 : index
      %c0_28 = arith.constant 0 : index
      %37 = vector.load %arg8[%c0_27, %c0_28] : memref<8x1xf32, #tpu.memory_space<vmem>>, vector<8x1xf32>
      tpu.vector_store %arg8[%c0_27, %c0_28], %36 {strides = array<i32>} : memref<8x1xf32, #tpu.memory_space<vmem>>, vector<8x1xf32>,
      %cst_29 = arith.constant 0.000000e+00 : f32
      %38 = vector.broadcast %cst_29 : f32 to vector<8x1xf32>
      %c0_30 = arith.constant 0 : index
      %c0_31 = arith.constant 0 : index
      %39 = vector.load %arg9[%c0_30, %c0_31] : memref<8x1xf32, #tpu.memory_space<vmem>>, vector<8x1xf32>
      tpu.vector_store %arg9[%c0_30, %c0_31], %38 {strides = array<i32>} : memref<8x1xf32, #tpu.memory_space<vmem>>, vector<8x1xf32>,
      %cst_32 = arith.constant 0.000000e+00 : f32
      %40 = vector.broadcast %cst_32 : f32 to vector<8x128xf32>
      %c0_33 = arith.constant 0 : index
      %c0_34 = arith.constant 0 : index
      %41 = vector.load %arg10[%c0_33, %c0_34] : memref<8x128xf32, #tpu.memory_space<vmem>>, vector<8x128xf32>
      tpu.vector_store %arg10[%c0_33, %c0_34], %40 {strides = array<i32>} : memref<8x128xf32, #tpu.memory_space<vmem>>, vector<8x128xf32>,
    } else {
    }
    %c0 = arith.constant 0 : index
    %c0_1 = arith.constant 0 : index
    %c0_2 = arith.constant 0 : index
    %3 = vector.load %arg4[%c0, %c0_1, %c0_2] : memref<1x8x128xbf16, #tpu.memory_space<vmem>>, vector<1x8x128xbf16>
    %4 = vector.shape_cast %3 : vector<1x8x128xbf16> to vector<8x128xbf16>
    %c0_3 = arith.constant 0 : index
    %c0_4 = arith.constant 0 : index
    %c0_5 = arith.constant 0 : index
    %5 = vector.load %arg5[%c0_3, %c0_4, %c0_5] : memref<1x8x128xbf16, #tpu.memory_space<vmem>>, vector<1x8x128xbf16>
    %6 = vector.shape_cast %5 : vector<1x8x128xbf16> to vector<8x128xbf16>
    %cst = arith.constant dense<0.000000e+00> : vector<8x8xf32>
    %7 = tpu.matmul %4, %6, %cst {dimension_numbers = #tpu.dot_dimension_numbers<[1], [1], [0], [0], [0, 0, 1, 0], [], []>} : vector<8x128xbf16>, vector<8x128xbf16>, vector<8x8xf32> -> vector<8x8xf32>
    %c0_6 = arith.constant 0 : index
    %c0_7 = arith.constant 0 : index
    %8 = vector.load %arg8[%c0_6, %c0_7] : memref<8x1xf32, #tpu.memory_space<vmem>>, vector<8x1xf32>
    %cst_8 = arith.constant dense<0xFF800000> : vector<8xf32>
    %9 = vector.multi_reduction <maximumf>, %7, %cst_8 [1] : vector<8x8xf32> to vector<8xf32>
    %10 = vector.shape_cast %9 : vector<8xf32> to vector<8x1xf32>
    %11 = arith.maximumf %8, %10 : vector<8x1xf32>
    %12 = arith.subf %8, %11 : vector<8x1xf32>
    %13 = math.exp %12 : vector<8x1xf32>
    %14 = vector.broadcast %11 : vector<8x1xf32> to vector<8x8xf32>
    %15 = arith.subf %7, %14 : vector<8x8xf32>
    %16 = math.exp %15 : vector<8x8xf32>
    %c0_9 = arith.constant 0 : index
    %c0_10 = arith.constant 0 : index
    %17 = vector.load %arg9[%c0_9, %c0_10] : memref<8x1xf32, #tpu.memory_space<vmem>>, vector<8x1xf32>
    %18 = arith.mulf %13, %17 : vector<8x1xf32>
    %cst_11 = arith.constant dense<0.000000e+00> : vector<8xf32>
    %19 = vector.multi_reduction <add>, %16, %cst_11 [1] : vector<8x8xf32> to vector<8xf32>
    %20 = vector.shape_cast %19 : vector<8xf32> to vector<8x1xf32>
    %21 = arith.addf %18, %20 : vector<8x1xf32>
    %c0_12 = arith.constant 0 : index
    %c0_13 = arith.constant 0 : index
    %22 = vector.load %arg9[%c0_12, %c0_13] : memref<8x1xf32, #tpu.memory_space<vmem>>, vector<8x1xf32>
    tpu.vector_store %arg9[%c0_12, %c0_13], %21 {strides = array<i32>} : memref<8x1xf32, #tpu.memory_space<vmem>>, vector<8x1xf32>,
    %c0_14 = arith.constant 0 : index
    %c0_15 = arith.constant 0 : index
    %23 = vector.load %arg10[%c0_14, %c0_15] : memref<8x128xf32, #tpu.memory_space<vmem>>, vector<8x128xf32>
    %24 = vector.broadcast %13 : vector<8x1xf32> to vector<8x128xf32>
    %25 = arith.mulf %24, %23 : vector<8x128xf32>
    %26 = arith.truncf %16 : vector<8x8xf32> to vector<8x8xbf16>
    %c0_16 = arith.constant 0 : index
    %c0_17 = arith.constant 0 : index
    %c0_18 = arith.constant 0 : index
    %27 = vector.load %arg6[%c0_16, %c0_17, %c0_18] : memref<1x8x128xbf16, #tpu.memory_space<vmem>>, vector<1x8x128xbf16>
    %28 = vector.shape_cast %27 : vector<1x8x128xbf16> to vector<8x128xbf16>
    %cst_19 = arith.constant dense<0.000000e+00> : vector<8x128xf32>
    %29 = tpu.matmul %26, %28, %cst_19 {dimension_numbers = #tpu.dot_dimension_numbers<[1], [0], [0], [1], [0, 0, 1, 1], [], []>} : vector<8x8xbf16>, vector<8x128xbf16>, vector<8x128xf32> -> vector<8x128xf32>
    %30 = arith.addf %25, %29 : vector<8x128xf32>
    %c0_20 = arith.constant 0 : index
    %c0_21 = arith.constant 0 : index
    %31 = vector.load %arg10[%c0_20, %c0_21] : memref<8x128xf32, #tpu.memory_space<vmem>>, vector<8x128xf32>
    tpu.vector_store %arg10[%c0_20, %c0_21], %30 {strides = array<i32>} : memref<8x128xf32, #tpu.memory_space<vmem>>, vector<8x128xf32>,
    %c0_22 = arith.constant 0 : index
    %c0_23 = arith.constant 0 : index
    %32 = vector.load %arg8[%c0_22, %c0_23] : memref<8x1xf32, #tpu.memory_space<vmem>>, vector<8x1xf32>
    tpu.vector_store %arg8[%c0_22, %c0_23], %11 {strides = array<i32>} : memref<8x1xf32, #tpu.memory_space<vmem>>, vector<8x1xf32>,
    %c0_i32_24 = arith.constant 0 : i32
    %33 = arith.cmpi eq, %arg3, %c0_i32_24 : i32
    %34 = arith.extui %33 : i1 to i32
    %c0_i32_25 = arith.constant 0 : i32
    %35 = arith.cmpi ne, %34, %c0_i32_25 : i32
    scf.if %35 {
      %c0_26 = arith.constant 0 : index
      %c0_27 = arith.constant 0 : index
      %36 = vector.load %arg9[%c0_26, %c0_27] : memref<8x1xf32, #tpu.memory_space<vmem>>, vector<8x1xf32>
      %37 = tpu.reciprocal %36 {approx = true} : vector<8x1xf32> -> vector<8x1xf32>
      %c0_28 = arith.constant 0 : index
      %c0_29 = arith.constant 0 : index
      %38 = vector.load %arg10[%c0_28, %c0_29] : memref<8x128xf32, #tpu.memory_space<vmem>>, vector<8x128xf32>
      %39 = vector.broadcast %37 : vector<8x1xf32> to vector<8x128xf32>
      %40 = arith.mulf %38, %39 : vector<8x128xf32>
      %c0_30 = arith.constant 0 : index
      %c0_31 = arith.constant 0 : index
      %c0_32 = arith.constant 0 : index
      %41 = vector.load %arg7[%c0_30, %c0_31, %c0_32] : memref<1x8x128xf32, #tpu.memory_space<vmem>>, vector<1x8x128xf32>
      %42 = vector.shape_cast %41 : vector<1x8x128xf32> to vector<8x128xf32>
      %43 = vector.shape_cast %40 : vector<8x128xf32> to vector<1x8x128xf32>
      tpu.vector_store %arg7[%c0_30, %c0_31, %c0_32], %43 {strides = array<i32>} : memref<1x8x128xf32, #tpu.memory_space<vmem>>, vector<1x8x128xf32>,
    } else {
    }
    return
  }
  func.func @transform_0(%arg0: i32, %arg1: i32, %arg2: i32, %arg3: i32) -> (i32, i32, i32) {
    %c3_i32 = arith.constant 3 : i32
    %0 = arith.muli %c3_i32, %arg1 : i32
    %c0_i32 = arith.constant 0 : i32
    return %arg0, %arg2, %0 : i32, i32, i32
  }
  func.func @transform_1(%arg0: i32, %arg1: i32, %arg2: i32, %arg3: i32) -> (i32, i32, i32) {
    %c3_i32 = arith.constant 3 : i32
    %0 = arith.muli %c3_i32, %arg1 : i32
    %c1_i32 = arith.constant 1 : i32
    %1 = arith.addi %0, %c1_i32 : i32
    %c0_i32 = arith.constant 0 : i32
    return %arg0, %arg3, %1 : i32, i32, i32
  }
  func.func @transform_2(%arg0: i32, %arg1: i32, %arg2: i32, %arg3: i32) -> (i32, i32, i32) {
    %c3_i32 = arith.constant 3 : i32
    %0 = arith.muli %c3_i32, %arg1 : i32
    %c2_i32 = arith.constant 2 : i32
    %1 = arith.addi %0, %c2_i32 : i32
    %c0_i32 = arith.constant 0 : i32
    return %arg0, %arg3, %1 : i32, i32, i32
  }
  func.func @transform_3(%arg0: i32, %arg1: i32, %arg2: i32, %arg3: i32) -> (i32, i32, i32) {
    %c0_i32 = arith.constant 0 : i32
    return %arg0, %arg2, %arg1 : i32, i32, i32
  }
}

</mosaic_0001>

<bundles_post_ra>
// kernel: _forward.7
= control target key start
LH: loop header
LB: loop body
LE: loop exit
PB: predicated region body
PF: predicated region fallthrough
CT: control target
= control target key end

     0   :  { %s1342_s0 = inlined_call_operand.vmem [shape: bf16[2,16,768], index: 0, kind: input, shape index: {}, may-alias: {0,1,2}]   ;;  %s1343_s1 = inlined_call_operand.vmem [shape: bf16[2,16,768], index: 1, kind: input, shape index: {}, may-alias: {0,1,2}]   ;;  %s1344_s2 = inlined_call_operand.vmem [shape: bf16[2,16,768], index: 2, kind: input, shape index: {}, may-alias: {0,1,2}]   ;;  %s1345_s3 = inlined_call_operand.vmem [shape: f32[2,16,256], index: 3, kind: output, shape index: {}]  }
   0x1   :  { %1349 = sst [smem:[#allocation16_spill]] %s1345_s3 }
   0x2   :  { %s1113_s12 = smov 0   ;;  %s1115_s13 = smov 0  }
   0x3   :  { %s1117_s14 = smov 0   ;;  %s1119_s15 = smov 0  }
   0x4   :  { %s1121_s16 = smov 0   ;;  %s1123_s17 = smov 0  }
   0x5   :  { %s1125_s18 = smov 0   ;;  %s1127_s19 = smov 0  }
   0x6   :  { %s1129_s20 = smov 0   ;;  %s1131_s21 = smov 0  }
   0x7   :  { %s1133_s22 = smov 0   ;;  %s1135_s23 = smov 0  }
   0x8   :  { %s1137_s24 = smov 0  }
   0x9 LB: > { %1350 = sst [smem:[#allocation9_spill]] %s1071_s20  ;;  %s35_s26 = sadd.s32 1, %s1079_s22  ;;  %s1087_s24 = sphi %s1137_s24, %s13_s24   ;;  %s1083_s23 = sphi %s1135_s23, %s1381_s23   ;;  %s1079_s22 = sphi %s1133_s22, %s1369_s22   ;;  %s1075_s21 = sphi %s1131_s21, %s1380_s21   ;;  %s1071_s20 = sphi %s1129_s20, %s1379_s20   ;;  %s1067_s19 = sphi %s1127_s19, %s1378_s19   ;;  %s1063_s18 = sphi %s1125_s18, %s1377_s18   ;;  %s1059_s17 = sphi %s1123_s17, %s1376_s17   ;;  %s1055_s16 = sphi %s1121_s16, %s1375_s16   ;;  %s1051_s15 = sphi %s1119_s15, %s1374_s15   ;;  %s1047_s14 = sphi %s1117_s14, %s1373_s14   ;;  %s1043_s13 = sphi %s1115_s13, %s1372_s13   ;;  %s1039_s12 = sphi %s1113_s12, %s1371_s12  }
   0xa   : > { %1351 = sst [smem:[#allocation10_spill]] %s1075_s21  ;;  %p37_p0 = scmp.ge.s32.totalorder %s35_s26, 2 }
   0xb   : > { %1352 = sst [smem:[#allocation11_spill]] %s1079_s22  ;;  %s39_s27 = sadd.s32 1, %s1083_s23 }
   0xc   : > { %s1182_s28 = smul.u32 3, %s1079_s22  ;;  %s52_s29 = sadd.s32 1, %s1067_s19 }
   0xd   : > { %s1383_s26 = smov (%p37_p0, %s35_s26), 0  ;;  %s1385_s27 = smov (!%p37_p0, %s39_s27), %s1083_s23 }
   0xe   : > { %1353 = sst [smem:[#allocation12_spill]] %s1383_s26  ;;  %s44_s30 = smul.u32 3, %s1383_s26 }
   0xf   : > { %p59_p1 = scmp.ne.s32.totalorder %s1067_s19, %s1063_s18  ;;  %p41_p2 = scmp.ge.s32.totalorder %s1385_s27, 2 }
  0x10   : > { %p60_p3 = scmp.eq.s32.totalorder %s1087_s24, 0  ;;  %s48_s4 = ssub.s32 %s1182_s28, %s44_s30 }
  0x11   : > { %s76_s5 = sadd.s32 1, %s1182_s28  ;;  %s1387_s27 = smov (%p41_p2, %s1385_s27), 0 }
  0x12   : > { %1354 = sst [smem:[#allocation13_spill]] %s1387_s27  ;;  %p1198_p4 = por %p60_p3, %p59_p1 }
  0x13   : > { %s78_s7 = sadd.s32 1, %s44_s30  ;;  %s45_s8 = ssub.s32 %s1083_s23, %s1387_s27 }
  0x14   : > { %s82_s9 = ssub.s32 %s76_s5, %s78_s7  ;;  %s49_s10 = sor.u32 %s48_s4, %s45_s8 }
  0x15   : > { %s83_s11 = sor.u32 %s82_s9, %s45_s8  ;;  %p50_p5 = scmp.eq.s32.totalorder %s49_s10, 0 }
  0x16   : > { %p84_p6 = scmp.eq.s32.totalorder %s83_s11, 0  ;;  %s86_s25 = sadd.s32 1, %s1059_s17 }
  0x17   : > { %p93_p7 = scmp.ne.s32.totalorder %s1059_s17, %s1055_s16  ;;  %s110_s4 = sadd.s32 2, %s1182_s28 }
  0x18   : > { %s1208_s3 = scalar_select %p50_p5, %s1067_s19, %s52_s29  }
  0x19   : > { %s1211_s20 = scalar_select %p84_p6, %s1059_s17, %s86_s25  }
  0x1a   : > { %1356 = sst [smem:[#allocation14_spill]] %s1208_s3  ;;  %p1215_p8 = por %p93_p7, %p60_p3 }
  0x1b   : > { %1357 = sst [smem:[#allocation15_spill]] %s1211_s20  ;;  %s112_s7 = sadd.s32 2, %s44_s30 }
  0x1c   : > { %s120_s9 = sadd.s32 1, %s1051_s15  ;;  %s116_s10 = ssub.s32 %s110_s4, %s112_s7 }
  0x1d   : > { %p127_p9 = scmp.ne.s32.totalorder %s1051_s15, %s1047_s14  ;;  %s117_s11 = sor.u32 %s116_s10, %s45_s8 }
  0x1e   : > { %s146_s27 = ssub.s32 %s1079_s22, %s1383_s26  ;;  %p118_p10 = scmp.eq.s32.totalorder %s117_s11, 0 }
  0x1f   : > { %p1227_p11 = por %p127_p9, %p60_p3  ;;  %s147_s25 = sor.u32 %s146_s27, %s45_s8 }
  0x20   : > { %s150_s3 = sadd.s32 1, %s1043_s13  ;;  %p148_p12 = scmp.eq.s32.totalorder %s147_s25, 0 }
  0x21   : > { %s1233_s20 = scalar_select %p118_p10, %s1051_s15, %s120_s9  }
  0x22   : > { %p160_p13 = scmp.ne.s32.totalorder %s1043_s13, %s1039_s12  ;;  %s1360_s21 = sadd.s32 4294967295, %s1087_s24  }
  0x23   : > { %p161_p0 = scmp.eq.s32.totalorder %s1360_s21, 3  ;;  %p818_p2 = scmp.ge.s32.totalorder %s1087_s24, 4 }
  0x24   : > { %s1240_s30 = scalar_select %p148_p12, %s1043_s13, %s150_s3  }
  0x25   : > { %p1242_p1 = por %p161_p0, %p160_p13  ;;  %183 = sbr.rel (%p818_p2) target bundleno = 68 (0x44), region = 16 }
  0x2c   : > { %186 = sbr.rel (!%p1198_p4) target bundleno = 52 (0x34), region = 20  ;;  %s188_s27 = sand.u32 (%p1198_p4), 1, %s1067_s19  }
  0x2d   : > { %s859_s8 = smul.u32 (%p1198_p4), 12, %s1083_s23  ;;  %s819_s7 = sshll.u32 (%p1198_p4), %s188_s27, 3 }
  0x2e   : > { %s190_s25 = scalar_lea.vmem (%p1198_p4), [#allocation5], %s819_s7 }
  0x2f   : > { %s196_s9 = sadd.s32 (%p1198_p4), %s859_s8, %s1182_s28 }
  0x30   : > { %s820_s21 = sshll.u32 (%p1198_p4), %s196_s9, 2 }
  0x31   : > { %s198_s11 = scalar_lea.vmem (%p1198_p4), %s1342_s0, %s820_s21 }
  0x32   : > { %v214_v0 = vld [vmem:[%s198_s11] sm:$0xf] (%p1198_p4)  ;;  %v216_v1 = vld [vmem:[%s198_s11 + $0x18] sm:$0xf] (%p1198_p4) }
  0x33   : > { %215 = vst [vmem:[%s190_s25] sm:$0xf] %v214_v0  ;;  %217 = vst [vmem:[%s190_s25 + $0x4] sm:$0xf] %v216_v1 }
  0x34 PF: > { %244 = sbr.rel (!%p1215_p8) target bundleno = 60 (0x3c), region = 61  ;;  %s246_s6 = sand.u32 (%p1215_p8), 1, %s1059_s17  }
  0x35   : > { %s710_s27 = smul.u32 (%p1215_p8), 12, %s1083_s23  ;;  %s821_s8 = sshll.u32 (%p1215_p8), %s246_s6, 3 }
  0x36   : > { %s248_s7 = scalar_lea.vmem (%p1215_p8), [#allocation6], %s821_s8 }
  0x37   : > { %s711_s9 = sadd.s32 (%p1215_p8), %s710_s27, %s1182_s28 }
  0x38   : > { %s822_s26 = sshll.u32 (%p1215_p8), %s711_s9, 2 }
  0x39   : > { %s713_s21 = scalar_lea.vmem (%p1215_p8), %s1343_s1, %s822_s26 }
  0x3a   : > { %v823_v2 = vld [vmem:[%s713_s21 + $0x4] sm:$0xf] (%p1215_p8)  ;;  %v824_v3 = vld [vmem:[%s713_s21 + $0x1c] sm:$0xf] (%p1215_p8) }
  0x3b   : > { %274 = vst [vmem:[%s248_s7] sm:$0xf] %v823_v2  ;;  %276 = vst [vmem:[%s248_s7 + $0x4] sm:$0xf] %v824_v3 }
  0x3c PF: > { %303 = sbr.rel (!%p1227_p11) target bundleno = 68 (0x44), region = 102  ;;  %s305_s5 = sand.u32 (%p1227_p11), 1, %s1051_s15  }
  0x3d   : > { %s720_s10 = smul.u32 (%p1227_p11), 12, %s1083_s23  ;;  %s825_s11 = sshll.u32 (%p1227_p11), %s305_s5, 3 }
  0x3e   : > { %s307_s8 = scalar_lea.vmem (%p1227_p11), [#allocation7], %s825_s11 }
  0x3f   : > { %s721_s25 = sadd.s32 (%p1227_p11), %s720_s10, %s1182_s28 }
  0x40   : > { %s826_s6 = sshll.u32 (%p1227_p11), %s721_s25, 2 }
  0x41   : > { %s723_s26 = scalar_lea.vmem (%p1227_p11), %s1344_s2, %s826_s6 }
  0x42   : > { %v827_v4 = vld [vmem:[%s723_s26 + $0x8] sm:$0xf] (%p1227_p11)  ;;  %v828_v5 = vld [vmem:[%s723_s26 + $0x20] sm:$0xf] (%p1227_p11) }
  0x43   : > { %333 = vst [vmem:[%s307_s8] sm:$0xf] %v827_v4  ;;  %335 = vst [vmem:[%s307_s8 + $0x4] sm:$0xf] %v828_v5 }
  0x44 PF: > { %p829_p3 = scmp.ge.s32.totalorder %s1087_s24, 1  ;;  %p361_p4 = scmp.lt.s32.totalorder %s1087_s24, 5 }
  0x46   : > { %p362_p5 = pnand %p829_p3, %p361_p4 }
  0x47   : > { %s375_s28 = sand.u32 (!%p362_p5), 1, %s1055_s16   ;;  %s368_s29 = sand.u32 (!%p362_p5), 1, %s1063_s18   ;;  %v1089_v6 = vmov (!%p362_p5), 0.0   ;;  %vm1090_vm0 = vmmov (!%p362_p5), 0   ;;  %vm426_vm1 = vcmask (!%p362_p5), 7168   ;;  %v1091_v9 = vmov (!%p362_p5), -inf  }
  0x48   : > { %365 = sbr.rel (%p362_p5) target bundleno = 889 (0x379), region = 143  ;;  %847 = vmatprep.subr.bf16.mxu0 (!%p362_p5), %v1089_v6  ;;  %s831_s9 = sshll.u32 (!%p362_p5), %s375_s28, 3  ;;  %849 = vmatprep.mubr.msk.bf16.mxu0 (!%p362_p5), %vm1090_vm0, %v1089_v6  ;;  %427 = vst.msk [vmem:[#allocation2] sm:$0xff] (!%p362_p5), %vm426_vm1, %v1091_v9  ;;  %428 = vst.msk [vmem:[#allocation2 + $0x8] sm:$0xff] (!%p362_p5), %vm426_vm1, %v1091_v9  ;;  %vm492_vm2 = vcmask (!%p362_p5), 130048   ;;  %v1092_v16 = vmov (!%p362_p5), 0  }
  0x49   : > { %s830_s3 = sshll.u32 (!%p362_p5), %s368_s29, 3  ;;  %853 = vmatprep.subr.bf16.mxu1 (!%p362_p5), %v1089_v6  ;;  %855 = vmatprep.mubr.msk.bf16.mxu1 (!%p362_p5), %vm1090_vm0, %v1089_v6  ;;  %s377_s21 = scalar_lea.vmem (!%p362_p5), [#allocation6], %s831_s9  ;;  %429 = vst.msk [vmem:[#allocation3] sm:$0xff] (!%p362_p5), %vm426_vm1, %v1089_v6  ;;  %430 = vst.msk [vmem:[#allocation3 + $0x8] sm:$0xff] (!%p362_p5), %vm426_vm1, %v1089_v6 }
  0x4a   : > { %v970_v7 = vld [vmem:[%s377_s21] sm:$0xff] (!%p362_p5)   ;;  %s370_s7 = scalar_lea.vmem (!%p362_p5), [#allocation5], %s830_s3  ;;  %968 = vset.pattern.permute.xlu1 (!%p362_p5), %v1092_v16  ;;  %969 = vset.pattern.permute.xlu0 (!%p362_p5), %v1092_v16  ;;  %s382_s16 = sand.u32 (!%p362_p5), 1, %s1047_s14  }
  0x4b   : > { %848 = vmatpush3.bf16.xpose.msra.mxu0 (!%p362_p5), %v970_v7  ;;  %v971_v8 = vld [vmem:[%s370_s7] sm:$0xff] (!%p362_p5)   ;;  %s832_s18 = sshll.u32 (!%p362_p5), %s382_s16, 3  ;;  %s409_s14 = sand.u32 (!%p362_p5), 1, %s1039_s12  }
  0x4c   : > { %s384_s5 = scalar_lea.vmem (!%p362_p5), [#allocation7], %s832_s18  ;;  %s833_s10 = sshll.u32 (!%p362_p5), %s409_s14, 4 }
  0x4d   : > { %v972_v25 = vld [vmem:[%s384_s5] sm:$0xff] (!%p362_p5)   ;;  %s411_s11 = scalar_lea.vmem (!%p362_p5), [#allocation8], %s833_s10 }
  0x4e   : > { %854 = vmatpush3.bf16.msra.mxu1 (!%p362_p5), %v972_v25 }
  0x4f   : > { %v490_v17 = vld [vmem:[#allocation2] sm:$0xff]  ;;  %v491_v20 = vld [vmem:[#allocation2 + $0x8] sm:$0xff]  ;;  %s1362_s25 = sld [smem:[#allocation10_spill]] (%p1242_p1)  ;;  %s1363_s6 = sld [smem:[#allocation9_spill]] (%p1242_p1) }
  0x50   : > { %v523_v41 = vld [vmem:[#allocation3] sm:$0xff]  ;;  %v524_v44 = vld [vmem:[#allocation3 + $0x8] sm:$0xff]  ;;  %s1364_s28 = sld [smem:[#allocation16_spill]] (%p1242_p1) }
  0x52   : > { %850 = vmatmul.mubr.bf16.vlgmr.msra.gmra.mrb[0].mxu0 %v971_v8 }
  0x55   : > { %s839_s27 = sshll.u32 (%p1242_p1), %s1362_s25, 2 }
  0x56   : > { %s645_s12 = sadd.s32 (%p1242_p1), %s1363_s6, %s839_s27 }
  0x57   : > { %s840_s22 = sshll.u32 (%p1242_p1), %s645_s12, 3 }
  0x58   : > { %s647_s29 = scalar_lea.vmem (%p1242_p1), %s1364_s28, %s840_s22 }
 0x125   : > { %v483_v10 = vpop.f32.mrb[0].mxu0 }
 0x126   : > { %v851_v11 = vpop.f32.mrb[1].mxu0  ;;  %v493_v12 = vsel %vm492_vm2, %v483_v10, -inf }
 0x127   : > { %494 = vmax.xlane.f32.xlu0 %v493_v12  ;;  %v486_v13 = vpop.f32.mrb[2].mxu0 }
 0x128   : > { %v852_v14 = vpop.f32.mrb[3].mxu0  ;;  %v496_v15 = vsel %vm492_vm2, %v486_v13, -inf }
 0x12b   : > { %497 = vmax.xlane.f32.xlu0 %v496_v15 }
 0x1b4   : > { %v495_v18 = vpop.xlane.xlu0 %494 }
 0x1b5   : > { %v499_v19 = vmax.f32 %v490_v17, %v495_v18 }
 0x1b7   : > { %v501_v21 = vsub.f32 %v490_v17, %v499_v19  ;;  %609 = vst.msk [vmem:[#allocation2] sm:$0xff] %vm426_vm1, %v499_v19  ;;  %509 = vperm.xlu1 %968, %v499_v19  }
 0x1b8   : > { %v498_v22 = vpop.xlane.xlu0 %497 }
 0x1b9   : > { %v500_v23 = vmax.f32 %v491_v20, %v498_v22  ;;  %v503_v38 = vmul.f32 1.442695, %v501_v21 }
 0x1bb   : > { %v502_v24 = vsub.f32 %v491_v20, %v500_v23  ;;  %610 = vst.msk [vmem:[#allocation2 + $0x8] sm:$0xff] %vm426_vm1, %v500_v23  ;;  %514 = vperm.xlu1 %968, %v500_v23  }
 0x1bd   : > { %v505_v37 = vmul.f32 1.442695, %v502_v24 }
 0x236   : > { %v510_v26 = vpop.permute.xlu1 %509 }
 0x237   : > { %v517_v27 = vsub.f32 %v483_v10, %v510_v26 }
 0x239   : > { %v519_v28 = vmul.f32 1.442695, %v517_v27 }
 0x23a   : > { %v515_v29 = vpop.permute.xlu1 %514 }
 0x23b   : > { %973 = vpow2.f32 %v519_v28  ;;  %v518_v30 = vsub.f32 %v486_v13, %v515_v29 }
 0x23d   : > { %v521_v31 = vmul.f32 1.442695, %v518_v30 }
 0x23f   : > { %975 = vpow2.f32 %v521_v31 }
 0x240   : > { %977 = vpow2.f32 %v505_v37 }
 0x241   : > { %979 = vpow2.f32 %v503_v38 }
 0x245   : > { %v974_v32 = vpop.eup %973 }
 0x246   : > { %v527_v33 = vsel %vm492_vm2, %v974_v32, 0.0 }
 0x247   : > { %528 = vadd.xlane.f32.xlu0 %v527_v33 }
 0x249   : > { %v976_v34 = vpop.eup %975 }
 0x24a   : > { %v530_v35 = vsel %vm492_vm2, %v976_v34, 0.0  ;;  %v552_v36 = vpack.c.bf16 %v976_v34, %v974_v32  ;;  %v978_v39 = vpop.eup %977 }
 0x24b   : > { %531 = vadd.xlane.f32.xlu1 %v530_v35  ;;  %v980_v40 = vpop.eup %979  ;;  %v526_v46 = vmul.f32 %v978_v39, %v524_v44 }
 0x24c   : > { %856 = vmatmul.mubr.msk.bf16.vlgmr.msra.gmra.mrb[0].mxu1 %vm492_vm2, %v552_v36  ;;  %v525_v42 = vmul.f32 %v980_v40, %v523_v41 }
 0x25c   : > { %547 = vperm.xlu1 %968, %v978_v39  }
 0x25d   : > { %542 = vperm.xlu0 %969, %v980_v40  }
 0x2d4   : > { %v529_v43 = vpop.xlane.xlu0 %528 }
 0x2d5   : > { %v533_v45 = vadd.f32 %v529_v43, %v525_v42 }
 0x2d7   : > { %536 = vst.msk [vmem:[#allocation3] sm:$0xff] %vm426_vm1, %v533_v45 }
 0x2d8   : > { %v532_v47 = vpop.xlane.xlu1 %531 }
 0x2d9   : > { %v534_v48 = vadd.f32 %v532_v47, %v526_v46 }
 0x2db   : > { %537 = vst.msk [vmem:[#allocation3 + $0x8] sm:$0xff] %vm426_vm1, %v534_v48 }
 0x2dc   : > { %v543_v57 = vpop.permute.xlu0 %542  ;;  %v548_v59 = vpop.permute.xlu1 %547 }
 0x2dd   : > { %v550_v58 = vmul.f32 0.0, %v543_v57  ;;  %v551_v62 = vmul.f32 0.0, %v548_v59 }
 0x2de   : > { %v614_v49 = vld [vmem:[#allocation3] sm:$0xff] }
 0x2df   : > { %981 = vrcp.f32 %v614_v49 }
 0x2e2   : > { %v615_v50 = vld [vmem:[#allocation3 + $0x8] sm:$0xff] }
 0x2e3   : > { %983 = vrcp.f32 %v615_v50 }
 0x2e9   : > { %v982_v51 = vpop.eup %981 }
 0x2ea   : > { %622 = vperm.xlu0 %969, %v982_v51  }
 0x2ed   : > { %v984_v52 = vpop.eup %983 }
 0x2ee   : > { %627 = vperm.xlu0 %969, %v984_v52  }
 0x31f   : > { %v598_v53 = vpop.f32.mrb[0].mxu1 }
 0x320   : > { %v857_v54 = vpop.f32.mrb[1].mxu1  ;;  %v605_v60 = vadd.f32 %v598_v53, %v550_v58 }
 0x321   : > { %v601_v55 = vpop.f32.mrb[2].mxu1 }
 0x322   : > { %v858_v56 = vpop.f32.mrb[3].mxu1  ;;  %v606_v0 = vadd.f32 %v601_v55, %v551_v62 }
 0x369   : > { %v623_v61 = vpop.permute.xlu0 %622 }
 0x36a   : > { %v630_v63 = vmul.f32 %v623_v61, %v605_v60  ;;  %640 = sbr.rel (!%p1242_p1) target bundleno = 889 (0x379), region = 167 }
 0x36c   : > { %632 = vst [vmem:[%s411_s11] sm:$0xff] %v630_v63 }
 0x36d   : > { %v628_v1 = vpop.permute.xlu0 %627 }
 0x36e   : > { %v631_v2 = vmul.f32 %v628_v1, %v606_v0 }
 0x370   : > { %633 = vst [vmem:[%s411_s11 + $0x8] sm:$0xff] %v631_v2 }
 0x373   : > { %v677_v3 = vld [vmem:[%s411_s11] sm:$0xff] }
 0x374   : > { %678 = vst [vmem:[%s647_s29] sm:$0xff] %v677_v3 }
 0x377   : > { %v679_v4 = vld [vmem:[%s411_s11 + $0x8] sm:$0xff] }
 0x378   : > { %680 = vst [vmem:[%s647_s29 + $0x10] sm:$0xff] %v679_v4 }
 0x379 PF: > { %s13_s24 = sadd.s32 1, %s1087_s24   ;;  %s1366_s9 = sld [smem:[#allocation15_spill]] }
 0x37a   : > { %p1298_p6 = scmp.ge.s32.totalorder %s13_s24, 6   ;;  %s1367_s3 = sld [smem:[#allocation14_spill]] }
 0x37b   : > { %s1368_s21 = sld [smem:[#allocation11_spill]]  ;;  %s1369_s22 = sld [smem:[#allocation12_spill]] }
 0x37c   : > { %s1370_s7 = sld [smem:[#allocation13_spill]]  ;;  %s1371_s12 = smov %s1043_s13 }
 0x37d   : > { %s1372_s13 = smov %s1240_s30  ;;  %s1373_s14 = smov %s1051_s15 }
 0x37e   : > { %s1374_s15 = smov %s1233_s20  ;;  %s1375_s16 = smov %s1059_s17 }
 0x37f   : > { %s1376_s17 = smov %s1366_s9  ;;  %s1377_s18 = smov %s1067_s19 }
 0x380   : > { %s1378_s19 = smov %s1367_s3  ;;  %12 = sbr.rel (!%p1298_p6) target bundleno = 9 (0x9), region = 252 }
 0x381   : > { %s1379_s20 = smov %s1368_s21  ;;  %s1380_s21 = smov %s1083_s23 }
 0x382   : > { %s1381_s23 = smov %s1370_s7 }

// kernel: _forward.6
= control target key start
LH: loop header
LB: loop body
LE: loop exit
PB: predicated region body
PF: predicated region fallthrough
CT: control target
= control target key end

     0   :  { %8 = vsyncpa [#allocation3], 0  ;;  %s1072_s0 = inlined_call_operand.hbm [shape: f32[2,16,32], index: 0, kind: input, shape index: {}]   ;;  %s1073_s1 = inlined_call_operand.hbm [shape: bf16[32,768], index: 1, kind: input, shape index: {}]   ;;  %s1074_s2 = inlined_call_operand.vmem [shape: f32[1,768], index: 2, kind: input, shape index: {}]   ;;  %s1075_s3 = inlined_call_operand.vmem [shape: bf16[2,16,768], index: 3, kind: output, shape index: {}]  }
   0x1   :  { %10 = vsyncpa [#allocation3 + $0x1], 0 }
   0x2   :  { %11 = vsyncpa [#allocation5], 0  ;;  %s903_s12 = smov 0   ;;  %s905_s13 = smov 0  }
   0x3   :  { %s907_s14 = smov 0   ;;  %s909_s15 = smov 0  }
   0x4   :  { %s911_s16 = smov 0   ;;  %s913_s17 = smov 0  }
   0x5 LB: > { %s630_s18 = sadd.s32 4294967295, %s874_s17   ;;  %p51_p0 = scmp.ne.s32.totalorder %s858_s13, %s854_s12  ;;  %s874_s17 = sphi %s913_s17, %s17_s17   ;;  %s870_s16 = sphi %s911_s16, %s1092_s16   ;;  %s866_s15 = sphi %s909_s15, %s1091_s15   ;;  %s862_s14 = sphi %s907_s14, %s1090_s14   ;;  %s858_s13 = sphi %s905_s13, %s1089_s13   ;;  %s854_s12 = sphi %s903_s12, %s1088_s12  }
   0x6   : > { %p933_p1 = scmp.eq.s32.totalorder %s630_s18, 0  ;;  %p632_p2 = scmp.ge.s32.totalorder %s874_s17, 1 }
   0x7   : > { %p132_p3 = scmp.lt.s32.totalorder %s874_s17, 3  ;;  %s876_s22 = smov [#allocation4]  }
   0x8   : > { %s1080_s19 = scalar_select %p933_p1, 1, 0 }
   0x9   : > { %p941_p4 = por %p933_p1, %p51_p0  ;;  %p945_p5 = pnand %p632_p2, %p132_p3 }
   0xa   : > { %s144_s23 = sshll.u32 %s876_s22, 4  ;;  %s29_s25 = sadd.s32 1, %s870_s16  ;;  %s145_s23 = int_to_ptr.vmem [resolvable:$true] %s144_s23 }
   0xb   : > { %s1081_s20 = scalar_select %p941_p4, 1, 0 }
   0xc   : > { %s1082_s21 = scalar_select %p945_p5, 1, 0 }
   0xd   : > { %p679_p6 = pneg %p945_p5  ;;  %s762_s28 = scalar_lea.hbm %s1073_s1, 1536 }
   0xe   : > { %p763_p8 = scmp.ne.s32.totalorder %s1073_s1, %s762_s28  ;;  %p769_p12 = scmp.lt.u32.totalorder %s762_s28, %s1073_s1 }
   0xf   : > { %p953_p7 = pnand %p679_p6, %p933_p1 }
  0x11   : > { %p764_p9 = pneg %p953_p7 }
  0x13   : > { %p765_p10 = pnand %p764_p9, %p763_p8 }
  0x15   : > { %p766_p11 = pneg %p765_p10 }
  0x17   : > { %p771_p13 = pnand %p769_p12, %p766_p11 }
  0x19   : > { %774 = shalt.err (!%p771_p13)
}
  0x1a   : > { %s775_s6 = scalar_lea.vmem %s145_s23, 1536  ;;  %p783_p6 = scmp.lt.s32.totalorder %s145_s23, %s145_s23 }
  0x1b   : > { %p776_p0 = scmp.ne.s32.totalorder %s145_s23, %s775_s6  ;;  %p784_p1 = scmp.lt.s32.totalorder %s775_s6, %s775_s6 }
  0x1d   : > { %p778_p2 = pnand %p776_p0, %p764_p9  ;;  %p785_p4 = por %p784_p1, %p783_p6 }
  0x1f   : > { %p779_p3 = pneg %p778_p2 }
  0x21   : > { %p786_p5 = pnand %p785_p4, %p779_p3 }
  0x23   : > { %789 = shalt.err (!%p786_p5)
}
  0x24   : > { %s877_s7 = smov 384   ;;  %s878_s8 = smov 24  }
  0x25   : > { %682 = dma.hbm_to_vmem [thread:$0]  (!%p953_p7), %s1073_s1, 1536, %s145_s23, [#allocation5], %s877_s7, %s877_s7, %s878_s8  }
  0x26   : > { %p31_p1 = scmp.ge.s32.totalorder %s29_s25, 2  ;;  %s38_s11 = sadd.s32 1, %s862_s14 }
  0x27   : > { %p45_p4 = scmp.ne.s32.totalorder %s862_s14, %s858_s13  ;;  %p46_p5 = scmp.eq.s32.totalorder %s874_s17, 0 }
  0x28   : > { %s1094_s25 = smov (%p31_p1, %s29_s25), 0  ;;  %p688_p9 = scmp.lt.s32.totalorder %s874_s17, 2 }
  0x29   : > { %p47_p8 = por %p46_p5, %p45_p4  ;;  %s33_s12 = ssub.s32 %s870_s16, %s1094_s25 }
  0x2a   : > { %s161_s18 = sand.u32 1, %s862_s14   ;;  %p36_p10 = scmp.eq.s32.totalorder %s33_s12, 0 }
  0x2b   : > { %s635_s22 = sshll.u32 %s161_s18, 4  ;;  %s665_s26 = sshll.u32 %s870_s16, 8 }
  0x2c   : > { %s986_s27 = scalar_select %p36_p10, %s862_s14, %s38_s11  }
  0x2d   : > { %s991_s23 = scalar_lea.hbm %s1072_s0, %s665_s26  ;;  %s165_s29 = scalar_lea.vmem [#allocation2], %s635_s22 }
  0x2e   : > { %s174_s30 = sshll.u32 %s165_s29, 4  ;;  %p993_p7 = pnand %p688_p9, %p47_p8  ;;  %s997_s30 = int_to_ptr.vmem [resolvable:$true] %s174_s30 }
  0x2f   : > { %s999_s5 = scalar_lea.sflag [#allocation3], %s161_s18  ;;  %s790_s6 = scalar_lea.hbm %s991_s23, 256 }
  0x30   : > { %p791_p11 = scmp.ne.s32.totalorder %s991_s23, %s790_s6  ;;  %p792_p12 = pneg %p993_p7 }
  0x31   : > { %s795_s9 = scalar_lea.hbm %s1072_s0, 512  ;;  %p796_p2 = scmp.lt.u32.totalorder %s991_s23, %s1072_s0 }
  0x32   : > { %p793_p13 = pnand %p792_p12, %p791_p11  ;;  %p797_p3 = scmp.lt.u32.totalorder %s795_s9, %s790_s6 }
  0x33   : > { %p799_p1 = scmp.lt.u32.totalorder %s790_s6, %s991_s23 }
  0x34   : > { %p794_p0 = pneg %p793_p13  ;;  %p798_p6 = por %p797_p3, %p796_p2 }
  0x36   : > { %p800_p4 = por %p799_p1, %p798_p6 }
  0x38   : > { %p801_p5 = pnand %p800_p4, %p794_p0 }
  0x3a   : > { %804 = shalt.err (!%p801_p5)
}
  0x3b   : > { %s805_s12 = scalar_lea.vmem %s997_s30, 256  ;;  %s879_s18 = smov [#allocation2]  }
  0x3c   : > { %p806_p8 = scmp.ne.s32.totalorder %s997_s30, %s805_s12  ;;  %s810_s22 = sshll.u32 %s879_s18, 4  ;;  %s811_s22 = int_to_ptr.vmem [resolvable:$false] %s810_s22 }
  0x3d   : > { %s812_s26 = scalar_lea.vmem %s811_s22, 512  ;;  %p813_p11 = scmp.lt.s32.totalorder %s997_s30, %s811_s22 }
  0x3e   : > { %p808_p9 = pnand %p806_p8, %p792_p12  ;;  %p814_p13 = scmp.lt.s32.totalorder %s812_s26, %s805_s12 }
  0x40   : > { %p809_p10 = pneg %p808_p9  ;;  %p815_p2 = por %p814_p13, %p813_p11 }
  0x42   : > { %p816_p3 = pnand %p815_p2, %p809_p10 }
  0x44   : > { %819 = shalt.err (!%p816_p3)
}
  0x45   : > { %s880_s24 = smov 128   ;;  %s881_s28 = smov 8  }
  0x46   : > { %686 = dma.hbm_to_vmem [thread:$0]  (!%p993_p7), %s991_s23, 256, %s997_s30, %s999_s5, %s880_s24, %s880_s24, %s881_s28  }
  0x47   : > { %p1085_p12 = scmp.ne.s32.totalorder %s1082_s21, 0 }
  0x48   : > { %s188_s29 = sand.u32 (!%p1085_p12), 1, %s858_s13   ;;  %p1086_p0 = scmp.ne.s32.totalorder (!%p1085_p12), %s1081_s20, 0 }
  0x49   : > { %186 = sbr.rel (%p1085_p12) target bundleno = 322 (0x142), region = 32  ;;  %s639_s6 = sshll.u32 (!%p1085_p12), %s188_s29, 4 }
  0x4a   : > { %s189_s7 = scalar_lea.sflag (!%p1085_p12), [#allocation3], %s188_s29  ;;  %s192_s8 = scalar_lea.vmem (!%p1085_p12), [#allocation2], %s639_s6 }
  0x50   : > { %845 = dma.done.wait (%p1086_p0), %s189_s7, 256  }
  0x51   : > { %847 = vsyncadd (%p1086_p0), %s189_s7, 4294967040  ;;  %p1087_p6 = scmp.ne.s32.totalorder %s1080_s19, 0 }
  0x53   : > { %849 = dma.done.wait (%p1087_p6), [#allocation5], 1536  }
  0x54   : > { %851 = vsyncadd (%p1087_p6), [#allocation5], 4294965760  ;;  %v882_v0 = vmov 0   ;;  %v744_v1 = vld [vmem:[#allocation4 + $0x4] ss:$24 sps:$4 sm:$0xff]   ;;  %vm344_vm0 = vcmask 261120   ;;  %v254_v16 = vlaneseq }
  0x55   : > { %380 = vmatprep.mubr.bf16.mxu0 %v882_v0  ;;  %423 = vmatprep.mubr.bf16.mxu1 %v882_v0  ;;  %v746_v2 = vld [vmem:[#allocation4] ss:$24 sps:$4 sm:$0xff]   ;;  %v747_v3 = vld [vmem:[#allocation4 + $0x34] ss:$24 sps:$4 sm:$0xff]   ;;  %v749_v4 = vld [vmem:[#allocation4 + $0x30] ss:$24 sps:$4 sm:$0xff]  }
  0x56   : > { %348 = vmatprep.subr.bf16.mxu0 %v744_v1  ;;  %v750_v5 = vld [vmem:[#allocation4 + $0xc] ss:$24 sps:$4 sm:$0xff]   ;;  %v752_v6 = vld [vmem:[#allocation4 + $0x8] ss:$24 sps:$4 sm:$0xff]   ;;  %v756_v12 = vld [vmem:[#allocation4 + $0x3c] ss:$24 sps:$4 sm:$0xff]  }
  0x57   : > { %349 = vmatpush1.bf16.msra.mxu0 %v746_v2  ;;  %v237_v7 = vld [vmem:[%s192_s8] sm:$0xff]  ;;  %v238_v8 = vld [vmem:[%s192_s8 + $0x8] sm:$0xff]  ;;  %391 = vmatprep.subr.bf16.mxu1 %v750_v5  ;;  %v255_v17 = vshrl.u32 %v254_v16, 7  ;;  %p226_p7 = scmp.lt.s32.totalorder %s866_s15, 1 }
  0x58   : > { %350 = vmatprep.subr.bf16.mxu0 %v747_v3  ;;  %v753_v9 = vld [vmem:[#allocation4 + $0x10] ss:$24 sps:$4 sm:$0xff]   ;;  %v755_v10 = vld [vmem:[#allocation4 + $0x14] ss:$24 sps:$4 sm:$0xff]   ;;  %392 = vmatpush1.bf16.msra.mxu1 %v752_v6  ;;  %v239_v11 = vpack.c.bf16 %v238_v8, %v237_v7  ;;  %v761_v14 = vld [vmem:[#allocation4 + $0x44] ss:$24 sps:$4 sm:$0xff]  }
  0x59   : > { %v758_v13 = vld [vmem:[#allocation4 + $0x38] ss:$24 sps:$4 sm:$0xff]   ;;  %393 = vmatprep.subr.bf16.mxu1 %v756_v12  ;;  %v256_v18 = vsub.s32 0, %v255_v17  ;;  %v252_v19 = vld [vmem:[%s1074_s2] sm:$0x3f]  ;;  %v260_v20 = vsub.s32 1, %v255_v17 }
  0x5a   : > { %v759_v15 = vld [vmem:[#allocation4 + $0x40] ss:$24 sps:$4 sm:$0xff]   ;;  %s1096_s15 = smov (!%p226_p7, %s866_s15), 1  ;;  %v264_v21 = vsub.s32 2, %v255_v17  ;;  %v268_v23 = vsub.s32 3, %v255_v17  ;;  %v272_v30 = vsub.s32 4, %v255_v17 }
  0x5b   : > { %351 = vmatpush1.bf16.msra.mxu0 %v749_v4  ;;  %v257_v22 = vrot.slane %v252_v19, %v256_v18  ;;  %v261_v24 = vrot.slane %v252_v19, %v260_v20  ;;  %s672_s21 = smul.u32 48, %s1096_s15  ;;  %v276_v33 = vsub.s32 5, %v255_v17 }
  0x5c   : > { %434 = vmatprep.subr.bf16.mxu0 %v755_v10  ;;  %394 = vmatpush1.bf16.msra.mxu1 %v758_v13  ;;  %v265_v26 = vrot.slane %v252_v19, %v264_v21  ;;  %v269_v29 = vrot.slane %v252_v19, %v268_v23  ;;  %v273_v43 = vrot.slane %v252_v19, %v272_v30 }
  0x5d   : > { %s1046_s4 = scalar_lea.vmem %s1075_s3, %s672_s21  ;;  %v277_v47 = vrot.slane %v252_v19, %v276_v33 }
  0x5e   : > { %654 = vmatmul.mubr.msk.bf16.vlgmr.msra.gmra.mrb[0].mxu0 %vm344_vm0, %v239_v11 }
  0x5f   : > { %435 = vmatpush1.bf16.msra.mxu0 %v753_v9  ;;  %466 = vmatprep.mubr.bf16.mxu0 %v882_v0 }
  0x60   : > { %436 = vmatprep.subr.bf16.mxu0 %v761_v14  ;;  %655 = vmatmul.mubr.msk.bf16.vlgmr.msra.gmra.mrb[0].mxu1 %vm344_vm0, %v239_v11 }
  0x63   : > { %437 = vmatpush1.bf16.msra.mxu0 %v759_v15 }
  0x66   : > { %656 = vmatmul.mubr.msk.bf16.vlgmr.msra.gmra.mrb[4].mxu0 %vm344_vm0, %v239_v11 }
 0x131   : > { %v382_v25 = vpop.f32.mrb[0].mxu0 }
 0x132   : > { %v383_v27 = vadd.f32 %v382_v25, %v257_v22  ;;  %v384_v28 = vpop.f32.mrb[1].mxu0 }
 0x133   : > { %v385_v31 = vadd.f32 %v384_v28, %v261_v24  ;;  %v386_v32 = vpop.f32.mrb[2].mxu0  ;;  %v425_v36 = vpop.f32.mrb[0].mxu1 }
 0x134   : > { %v387_v34 = vadd.f32 %v386_v32, %v257_v22  ;;  %v388_v35 = vpop.f32.mrb[3].mxu0  ;;  %v426_v39 = vadd.f32 %v425_v36, %v265_v26  ;;  %v427_v40 = vpop.f32.mrb[1].mxu1 }
 0x135   : > { %v666_v37 = vpack.c.bf16 %v385_v31, %v383_v27  ;;  %v389_v38 = vadd.f32 %v388_v35, %v261_v24  ;;  %v428_v41 = vadd.f32 %v427_v40, %v269_v29  ;;  %v429_v42 = vpop.f32.mrb[2].mxu1 }
 0x136   : > { %v430_v45 = vadd.f32 %v429_v42, %v265_v26  ;;  %v431_v46 = vpop.f32.mrb[3].mxu1 }
 0x137   : > { %513 = vst [vmem:[%s1046_s4] sm:$0xff] %v666_v37  ;;  %v669_v44 = vpack.c.bf16 %v389_v38, %v387_v34  ;;  %v667_v48 = vpack.c.bf16 %v428_v41, %v426_v39  ;;  %v432_v49 = vadd.f32 %v431_v46, %v269_v29 }
 0x139   : > { %516 = vst [vmem:[%s1046_s4 + $0x18] sm:$0xff] %v669_v44  ;;  %v468_v50 = vpop.f32.mrb[4].mxu0  ;;  %514 = vst [vmem:[%s1046_s4 + $0x8] sm:$0xff] %v667_v48  ;;  %v670_v52 = vpack.c.bf16 %v432_v49, %v430_v45 }
 0x13a   : > { %v469_v51 = vadd.f32 %v468_v50, %v273_v43  ;;  %v470_v53 = vpop.f32.mrb[5].mxu0 }
 0x13b   : > { %v471_v54 = vadd.f32 %v470_v53, %v277_v47  ;;  %v472_v55 = vpop.f32.mrb[6].mxu0  ;;  %517 = vst [vmem:[%s1046_s4 + $0x20] sm:$0xff] %v670_v52 }
 0x13c   : > { %v473_v56 = vadd.f32 %v472_v55, %v273_v43  ;;  %v474_v57 = vpop.f32.mrb[7].mxu0 }
 0x13d   : > { %v668_v58 = vpack.c.bf16 %v471_v54, %v469_v51  ;;  %v475_v59 = vadd.f32 %v474_v57, %v277_v47 }
 0x13f   : > { %515 = vst [vmem:[%s1046_s4 + $0x10] sm:$0xff] %v668_v58  ;;  %v671_v60 = vpack.c.bf16 %v475_v59, %v473_v56 }
 0x141   : > { %518 = vst [vmem:[%s1046_s4 + $0x28] sm:$0xff] %v671_v60 }
 0x142 PF: > { %s17_s17 = sadd.s32 1, %s874_s17   ;;  %s1088_s12 = smov %s858_s13 }
 0x143   : > { %p14_p1 = scmp.ge.s32.totalorder %s17_s17, 4   ;;  %s1089_s13 = smov %s862_s14 }
 0x144   : > { %s1090_s14 = smov %s986_s27  ;;  %s1091_s15 = smov %s870_s16 }
 0x145   : > { %s1092_s16 = smov %s1094_s25  ;;  %16 = sbr.rel (!%p14_p1) target bundleno = 5 (0x5), region = 76 }
 0x14c   :  { %551 = vsyncpa [#allocation3], 1 }
 0x14d   :  { %553 = vsyncpa [#allocation3 + $0x1], 1 }
 0x14e   :  { %554 = vsyncpa [#allocation5], 1 }

// kernel: _forward.4
= control target key start
LH: loop header
LB: loop body
LE: loop exit
PB: predicated region body
PF: predicated region fallthrough
CT: control target
= control target key end

     0   :  { %s667_s12 = smov 0   ;;  %s669_s13 = smov 0   ;;  %s743_s0 = inlined_call_operand.vmem [shape: f32[2,8,32], index: 0, kind: input, shape index: {}]   ;;  %s744_s1 = inlined_call_operand.vmem [shape: bf16[32,768], index: 1, kind: input, shape index: {}]   ;;  %s745_s2 = inlined_call_operand.vmem [shape: f32[1,768], index: 2, kind: input, shape index: {}]   ;;  %s746_s3 = inlined_call_operand.vmem [shape: bf16[2,8,768], index: 3, kind: output, shape index: {}]  }
   0x1   :  { %s671_s14 = smov 0  }
   0x2 LB: > { %s25_s15 = sadd.s32 1, %s640_s13  ;;  %p552_p0 = scmp.ge.s32.totalorder %s644_s14, 1  ;;  %s644_s14 = sphi %s671_s14, %s13_s14   ;;  %s640_s13 = sphi %s669_s13, %s748_s13   ;;  %s636_s12 = sphi %s667_s12, %s747_s12  }
   0x3   : > { %p27_p1 = scmp.ge.s32.totalorder %s25_s15, 2  ;;  %p155_p2 = scmp.lt.s32.totalorder %s644_s14, 3 }
   0x5   : > { %s750_s15 = smov (%p27_p1, %s25_s15), 0  ;;  %p156_p3 = pnand %p552_p0, %p155_p2 }
   0x6   : > { %v604_v0 = vld [vmem:[%s744_s1 + $0x4] ss:$24 sps:$4 sm:$0xff] (!%p156_p3)   ;;  %p185_p4 = scmp.lt.s32.totalorder (!%p156_p3), %s636_s12, 1  ;;  %v606_v1 = vld [vmem:[%s744_s1] ss:$24 sps:$4 sm:$0xff] (!%p156_p3)   ;;  %v646_v2 = vmov (!%p156_p3), 0   ;;  %v218_v15 = vlaneseq (!%p156_p3) }
   0x7   : > { %159 = sbr.rel (%p156_p3) target bundleno = 246 (0xf6), region = 32  ;;  %344 = vmatprep.mubr.bf16.mxu0 (!%p156_p3), %v646_v2  ;;  %385 = vmatprep.mubr.bf16.mxu1 (!%p156_p3), %v646_v2  ;;  %v607_v3 = vld [vmem:[%s744_s1 + $0x34] ss:$24 sps:$4 sm:$0xff] (!%p156_p3)   ;;  %v609_v4 = vld [vmem:[%s744_s1 + $0x30] ss:$24 sps:$4 sm:$0xff] (!%p156_p3)   ;;  %vm308_vm0 = vcmask (!%p156_p3), 261120  }
   0x8   : > { %312 = vmatprep.subr.bf16.mxu0 (!%p156_p3), %v604_v0  ;;  %v610_v5 = vld [vmem:[%s744_s1 + $0xc] ss:$24 sps:$4 sm:$0xff] (!%p156_p3)   ;;  %v612_v6 = vld [vmem:[%s744_s1 + $0x8] ss:$24 sps:$4 sm:$0xff] (!%p156_p3)   ;;  %v616_v9 = vld [vmem:[%s744_s1 + $0x3c] ss:$24 sps:$4 sm:$0xff] (!%p156_p3)  }
   0x9   : > { %313 = vmatpush1.bf16.msra.mxu0 (!%p156_p3), %v606_v1  ;;  %353 = vmatprep.subr.bf16.mxu1 (!%p156_p3), %v610_v5  ;;  %v615_v7 = vld [vmem:[%s744_s1 + $0x14] ss:$24 sps:$4 sm:$0xff] (!%p156_p3)   ;;  %v618_v10 = vld [vmem:[%s744_s1 + $0x38] ss:$24 sps:$4 sm:$0xff] (!%p156_p3)   ;;  %v621_v13 = vld [vmem:[%s744_s1 + $0x44] ss:$24 sps:$4 sm:$0xff] (!%p156_p3)  }
   0xa   : > { %314 = vmatprep.subr.bf16.mxu0 (!%p156_p3), %v607_v3  ;;  %354 = vmatpush1.bf16.msra.mxu1 (!%p156_p3), %v612_v6  ;;  %v613_v12 = vld [vmem:[%s744_s1 + $0x10] ss:$24 sps:$4 sm:$0xff] (!%p156_p3)   ;;  %v619_v14 = vld [vmem:[%s744_s1 + $0x40] ss:$24 sps:$4 sm:$0xff] (!%p156_p3)   ;;  %v219_v16 = vshrl.u32 (!%p156_p3), %v218_v15, 7 }
   0xb   : > { %355 = vmatprep.subr.bf16.mxu1 (!%p156_p3), %v616_v9  ;;  %v216_v18 = vld [vmem:[%s745_s2] sm:$0x3f] (!%p156_p3) }
   0xc   : > { %v220_v17 = vsub.s32 (!%p156_p3), 0, %v219_v16  ;;  %v224_v19 = vsub.s32 (!%p156_p3), 1, %v219_v16  ;;  %v228_v20 = vsub.s32 (!%p156_p3), 2, %v219_v16  ;;  %v232_v22 = vsub.s32 (!%p156_p3), 3, %v219_v16 }
   0xd   : > { %315 = vmatpush1.bf16.msra.mxu0 (!%p156_p3), %v609_v4  ;;  %v236_v29 = vsub.s32 (!%p156_p3), 4, %v219_v16  ;;  %v240_v32 = vsub.s32 (!%p156_p3), 5, %v219_v16 }
   0xe   : > { %s752_s12 = smov (!%p185_p4, %s636_s12), 1  ;;  %394 = vmatprep.subr.bf16.mxu0 %v615_v7  ;;  %356 = vmatpush1.bf16.msra.mxu1 %v618_v10  ;;  %v221_v21 = vrot.slane %v216_v18, %v220_v17  ;;  %v225_v23 = vrot.slane %v216_v18, %v224_v19  ;;  %v229_v25 = vrot.slane %v216_v18, %v228_v20 }
   0xf   : > { %s553_s28 = sshll.u32 %s752_s12, 3  ;;  %s578_s23 = smul.u32 24, %s752_s12  ;;  %v233_v28 = vrot.slane %v216_v18, %v232_v22  ;;  %v237_v40 = vrot.slane %v216_v18, %v236_v29  ;;  %v241_v42 = vrot.slane %v216_v18, %v240_v32 }
  0x10   : > { %s191_s4 = scalar_lea.vmem %s743_s0, %s553_s28 }
  0x11   : > { %v202_v8 = vld [vmem:[%s191_s4] sm:$0xff]  ;;  %s200_s26 = scalar_lea.vmem %s746_s3, %s578_s23 }
  0x12   : > { %v203_v11 = vpack.c.bf16 %v202_v8, %v202_v8 }
  0x14   : > { %567 = vmatmul.mubr.msk.bf16.vlgmr.msra.gmra.mrb[0].mxu0 %vm308_vm0, %v203_v11  ;;  %568 = vmatmul.mubr.msk.bf16.vlgmr.msra.gmra.mrb[0].mxu1 %vm308_vm0, %v203_v11 }
  0x15   : > { %395 = vmatpush1.bf16.msra.mxu0 %v613_v12  ;;  %426 = vmatprep.mubr.bf16.mxu0 %v646_v2 }
  0x16   : > { %396 = vmatprep.subr.bf16.mxu0 %v621_v13 }
  0x19   : > { %397 = vmatpush1.bf16.msra.mxu0 %v619_v14 }
  0x1c   : > { %569 = vmatmul.mubr.msk.bf16.vlgmr.msra.gmra.mrb[4].mxu0 %vm308_vm0, %v203_v11 }
  0xe7   : > { %v346_v24 = vpop.f32.mrb[0].mxu0  ;;  %v387_v34 = vpop.f32.mrb[0].mxu1 }
  0xe8   : > { %v347_v26 = vadd.f32 %v346_v24, %v221_v21  ;;  %v348_v27 = vpop.f32.mrb[1].mxu0  ;;  %v388_v36 = vadd.f32 %v387_v34, %v229_v25  ;;  %v389_v37 = vpop.f32.mrb[1].mxu1 }
  0xe9   : > { %v349_v30 = vadd.f32 %v348_v27, %v225_v23  ;;  %v350_v31 = vpop.f32.mrb[2].mxu0  ;;  %v390_v38 = vadd.f32 %v389_v37, %v233_v28  ;;  %v391_v39 = vpop.f32.mrb[2].mxu1 }
  0xea   : > { %v351_v33 = vpop.f32.mrb[3].mxu0  ;;  %v392_v41 = vpop.f32.mrb[3].mxu1 }
  0xeb   : > { %v575_v35 = vpack.c.bf16 %v349_v30, %v347_v26  ;;  %v576_v43 = vpack.c.bf16 %v390_v38, %v388_v36 }
  0xed   : > { %459 = vst [vmem:[%s200_s26] sm:$0xff] %v575_v35  ;;  %460 = vst [vmem:[%s200_s26 + $0x8] sm:$0xff] %v576_v43 }
  0xef   : > { %v428_v44 = vpop.f32.mrb[4].mxu0 }
  0xf0   : > { %v429_v45 = vadd.f32 %v428_v44, %v237_v40  ;;  %v430_v46 = vpop.f32.mrb[5].mxu0 }
  0xf1   : > { %v431_v47 = vadd.f32 %v430_v46, %v241_v42  ;;  %v432_v48 = vpop.f32.mrb[6].mxu0 }
  0xf2   : > { %v433_v49 = vpop.f32.mrb[7].mxu0 }
  0xf3   : > { %v577_v50 = vpack.c.bf16 %v431_v47, %v429_v45 }
  0xf5   : > { %461 = vst [vmem:[%s200_s26 + $0x10] sm:$0xff] %v577_v50 }
  0xf6 PF: > { %s13_s14 = sadd.s32 1, %s644_s14   ;;  %s747_s12 = smov %s640_s13 }
  0xf7   : > { %p10_p5 = scmp.ge.s32.totalorder %s13_s14, 4   ;;  %s748_s13 = smov %s750_s15 }
  0xf9   :  { %12 = sbr.rel (!%p10_p5) target bundleno = 2 (0x2), region = 62 }

// kernel: _forward.5
= control target key start
LH: loop header
LB: loop body
LE: loop exit
PB: predicated region body
PF: predicated region fallthrough
CT: control target
= control target key end

     0   :  { %s821_s12 = smov 0   ;;  %s823_s13 = smov 0   ;;  %s905_s0 = inlined_call_operand.vmem [shape: bf16[2,8,768], index: 0, kind: input, shape index: {}, may-alias: {0,1,2}]   ;;  %s906_s1 = inlined_call_operand.vmem [shape: bf16[2,8,768], index: 1, kind: input, shape index: {}, may-alias: {0,1,2}]   ;;  %s907_s2 = inlined_call_operand.vmem [shape: bf16[2,8,768], index: 2, kind: input, shape index: {}, may-alias: {0,1,2}]   ;;  %s908_s3 = inlined_call_operand.vmem [shape: f32[2,8,256], index: 3, kind: output, shape index: {}]  }
   0x1   :  { %s825_s14 = smov 0   ;;  %s827_s15 = smov 0  }
   0x2   :  { %s829_s16 = smov 0  }
   0x3 LB: > { %s35_s17 = sadd.s32 1, %s787_s14  ;;  %s39_s18 = sadd.s32 1, %s791_s15  ;;  %s795_s16 = sphi %s829_s16, %s13_s16   ;;  %s791_s15 = sphi %s827_s15, %s912_s15   ;;  %s787_s14 = sphi %s825_s14, %s911_s14   ;;  %s783_s13 = sphi %s823_s13, %s910_s13   ;;  %s779_s12 = sphi %s821_s12, %s909_s12  }
   0x4   : > { %p37_p0 = scmp.ge.s32.totalorder %s35_s17, 2  ;;  %p679_p1 = scmp.ge.s32.totalorder %s795_s16, 1 }
   0x5   : > { %p240_p2 = scmp.lt.s32.totalorder %s795_s16, 5 }
   0x6   : > { %s914_s17 = smov (%p37_p0, %s35_s17), 0  ;;  %s916_s18 = smov (!%p37_p0, %s39_s18), %s791_s15 }
   0x7   : > { %p241_p3 = pnand %p679_p1, %p240_p2  ;;  %p41_p4 = scmp.ge.s32.totalorder %s916_s18, 2 }
   0x8   : > { %s854_s19 = smul.u32 (!%p241_p3), 3, %s779_s12  ;;  %p308_p5 = scmp.lt.s32.totalorder (!%p241_p3), %s783_s13, 1  ;;  %v797_v0 = vmov (!%p241_p3), 0.0   ;;  %vm798_vm0 = vmmov (!%p241_p3), 0   ;;  %vm370_vm1 = vcmask (!%p241_p3), 7168   ;;  %v799_v3 = vmov (!%p241_p3), -inf  }
   0x9   : > { %s918_s18 = smov (%p41_p4, %s916_s18), 0  ;;  %244 = sbr.rel (%p241_p3) target bundleno = 825 (0x339), region = 32 }
   0xa   : > { %692 = vmatprep.subr.bf16.mxu0 (!%p241_p3), %v797_v0  ;;  %694 = vmatprep.mubr.msk.bf16.mxu0 (!%p241_p3), %vm798_vm0, %v797_v0  ;;  %s322_s20 = sadd.s32 (!%p241_p3), 1, %s854_s19  ;;  %p312_p6 = scmp.lt.s32.totalorder (!%p241_p3), %s854_s19, 5  ;;  %371 = vst.msk [vmem:[#allocation2] sm:$0xff] (!%p241_p3), %vm370_vm1, %v799_v3  ;;  %372 = vst.msk [vmem:[#allocation3] sm:$0xff] (!%p241_p3), %vm370_vm1, %v797_v0  ;;  %vm417_vm2 = vcmask (!%p241_p3), 64512   ;;  %v800_v9 = vmov (!%p241_p3), 0  }
   0xb   : > { %698 = vmatprep.subr.bf16.mxu1 (!%p241_p3), %v797_v0  ;;  %700 = vmatprep.mubr.msk.bf16.mxu1 (!%p241_p3), %vm798_vm0, %v797_v0  ;;  %p327_p7 = scmp.lt.s32.totalorder (!%p241_p3), %s322_s20, 5  ;;  %s338_s6 = sadd.s32 (!%p241_p3), 2, %s854_s19  ;;  %vm453_vm3 = vcmask (!%p241_p3), 1043456  }
   0xc   : > { %749 = vset.pattern.permute.xlu0 (!%p241_p3), %v800_v9  ;;  %750 = vset.pattern.permute.xlu1 (!%p241_p3), %v800_v9  ;;  %p343_p8 = scmp.lt.s32.totalorder (!%p241_p3), %s338_s6, 5  ;;  %p357_p9 = scmp.lt.s32.totalorder (!%p241_p3), %s779_s12, 1 }
  0x10   : > { %s920_s13 = smov (!%p308_p5, %s783_s13), 1  ;;  %s922_s20 = smov (!%p327_p7, %s322_s20), 5 }
  0x11   : > { %s861_s21 = smul.u32 6, %s920_s13  ;;  %v416_v10 = vld [vmem:[#allocation2] sm:$0xff]  ;;  %s924_s6 = smov (!%p343_p8, %s338_s6), 5  ;;  %v433_v24 = vld [vmem:[#allocation3] sm:$0xff] }
  0x12   : > { %s313_s22 = scalar_select %p312_p6, %s854_s19, 5 }
  0x13   : > { %s332_s24 = sadd.s32 %s861_s21, %s922_s20  ;;  %s348_s7 = sadd.s32 %s861_s21, %s924_s6 }
  0x14   : > { %s317_s23 = sadd.s32 %s861_s21, %s313_s22  ;;  %s681_s25 = sshll.u32 %s332_s24, 2 }
  0x15   : > { %s334_s28 = scalar_lea.vmem %s906_s1, %s681_s25  ;;  %s680_s29 = sshll.u32 %s317_s23, 2 }
  0x16   : > { %v375_v1 = vld [vmem:[%s334_s28] sm:$0xf]  ;;  %s319_s5 = scalar_lea.vmem %s905_s0, %s680_s29  ;;  %s682_s8 = sshll.u32 %s348_s7, 2 }
  0x17   : > { %693 = vmatpush3.bf16.xpose.msra.mxu0 %v375_v1  ;;  %v374_v2 = vld [vmem:[%s319_s5] sm:$0xf]  ;;  %s350_s11 = scalar_lea.vmem %s907_s2, %s682_s8  ;;  %s926_s12 = smov (!%p357_p9, %s779_s12), 1 }
  0x18   : > { %v449_v14 = vld [vmem:[%s350_s11] sm:$0xf]  ;;  %s683_s19 = sshll.u32 %s920_s13, 1 }
  0x19   : > { %v455_v15 = vsel %vm453_vm3, %v449_v14, 0  ;;  %s362_s20 = sadd.s32 %s683_s19, %s926_s12 }
  0x1a   : > { %699 = vmatpush3.bf16.msra.mxu1 %v455_v15  ;;  %s684_s21 = sshll.u32 %s362_s20, 3 }
  0x1b   : > { %s364_s24 = scalar_lea.vmem %s908_s3, %s684_s21 }
  0x1e   : > { %695 = vmatmul.mubr.bf16.vlgmr.msra.gmra.mrb[0].mxu0 %v374_v2 }
  0xf1   : > { %v410_v4 = vpop.f32.mrb[0].mxu0 }
  0xf2   : > { %v696_v5 = vpop.f32.mrb[1].mxu0  ;;  %v418_v6 = vsel %vm417_vm2, %v410_v4, -inf }
  0xf3   : > { %419 = vmax.xlane.f32.xlu0 %v418_v6  ;;  %v413_v7 = vpop.f32.mrb[2].mxu0 }
  0xf4   : > { %v697_v8 = vpop.f32.mrb[3].mxu0 }
 0x180   : > { %v420_v11 = vpop.xlane.xlu0 %419 }
 0x181   : > { %v421_v12 = vmax.f32 %v416_v10, %v420_v11 }
 0x183   : > { %v422_v13 = vsub.f32 %v416_v10, %v421_v12  ;;  %499 = vst.msk [vmem:[#allocation2] sm:$0xff] %vm370_vm1, %v421_v12  ;;  %427 = vperm.xlu0 %749, %v421_v12  }
 0x185   : > { %v423_v22 = vmul.f32 1.442695, %v422_v13 }
 0x202   : > { %v428_v16 = vpop.permute.xlu0 %427 }
 0x203   : > { %v430_v17 = vsub.f32 %v410_v4, %v428_v16 }
 0x205   : > { %v431_v18 = vmul.f32 1.442695, %v430_v17 }
 0x207   : > { %751 = vpow2.f32 %v431_v18 }
 0x208   : > { %753 = vpow2.f32 %v423_v22 }
 0x211   : > { %v752_v19 = vpop.eup %751 }
 0x212   : > { %v435_v20 = vsel %vm417_vm2, %v752_v19, 0.0  ;;  %v448_v21 = vpack.c.bf16 %v752_v19, %v752_v19  ;;  %v754_v23 = vpop.eup %753 }
 0x213   : > { %436 = vadd.xlane.f32.xlu1 %v435_v20  ;;  %v434_v25 = vmul.f32 %v754_v23, %v433_v24 }
 0x214   : > { %701 = vmatmul.mubr.msk.bf16.vlgmr.msra.gmra.mrb[0].mxu1 %vm417_vm2, %v448_v21 }
 0x224   : > { %444 = vperm.xlu1 %750, %v754_v23  }
 0x2a0   : > { %v437_v26 = vpop.xlane.xlu1 %436 }
 0x2a1   : > { %v438_v27 = vadd.f32 %v437_v26, %v434_v25 }
 0x2a3   : > { %440 = vst.msk [vmem:[#allocation3] sm:$0xff] %vm370_vm1, %v438_v27 }
 0x2a4   : > { %v445_v34 = vpop.permute.xlu1 %444 }
 0x2a5   : > { %v447_v35 = vmul.f32 0.0, %v445_v34 }
 0x2aa   : > { %v503_v28 = vld [vmem:[#allocation3] sm:$0xff] }
 0x2ab   : > { %755 = vrcp.f32 %v503_v28 }
 0x2b5   : > { %v756_v29 = vpop.eup %755 }
 0x2b6   : > { %508 = vperm.xlu1 %750, %v756_v29  }
 0x2e7   : > { %v491_v30 = vpop.f32.mrb[0].mxu1 }
 0x2e8   : > { %v702_v31 = vpop.f32.mrb[1].mxu1  ;;  %v497_v36 = vadd.f32 %v491_v30, %v447_v35 }
 0x2e9   : > { %v494_v32 = vpop.f32.mrb[2].mxu1 }
 0x2ea   : > { %v703_v33 = vpop.f32.mrb[3].mxu1 }
 0x335   : > { %v509_v37 = vpop.permute.xlu1 %508 }
 0x336   : > { %v511_v38 = vmul.f32 %v509_v37, %v497_v36 }
 0x338   : > { %512 = vst [vmem:[%s364_s24] sm:$0xff] %v511_v38 }
 0x339 PF: > { %s13_s16 = sadd.s32 1, %s795_s16   ;;  %s909_s12 = smov %s787_s14 }
 0x33a   : > { %p10_p10 = scmp.ge.s32.totalorder %s13_s16, 6   ;;  %s910_s13 = smov %s791_s15 }
 0x33b   : > { %s911_s14 = smov %s914_s17  ;;  %s912_s15 = smov %s918_s18 }
 0x33c   :  { %12 = sbr.rel (!%p10_p10) target bundleno = 3 (0x3), region = 76 }

</bundles_post_ra>
